<compile_context>
chip_gen: v7x
topology: tpu7x:2x2x1
jax: 0.10.0
libtpu: 0.0.40
codegen_flags: <defaults>
</compile_context>

<pallas_src>
import jax
import jax.numpy as jnp
from jax.experimental import pallas as pl
from jax.experimental.pallas import tpu as pltpu


HIDDEN = 768        # fixed by the module (nn.Linear(768, classes_num))
CLASSES = 4         # classes_num (small, synthetic)
VOCAB = 128         # synthetic vocab for the embedding "encoder" (1 lane-vreg)
LANES = 128         # lane-dense padded output width
MAX_BLOCK_N = 512   # max batch rows per grid step (fills MXU rows on v6e/v7x)


def _round_up(x, m):
    return ((x + m - 1) // m) * m


def _pick_block_n(n):
    """Batch tile: as fat as possible (<=512, multiple of 16), but split the
    batch in two once it is big enough so the 'parallel' grid axis can occupy
    both v7x TensorCores."""
    half = _round_up(max((n + 1) // 2, 1), 16)
    return max(16, min(MAX_BLOCK_N, half))


def _head_kernel(ids_ref, emb_ref, wp_ref, bp_ref, wl_ref, bl_ref, out_ref):
    """Fused CLS embedding gather + BERT pooler + dropout(eval) + classifier + sigmoid.

    ids_ref : (Bn, 1)    int32  CLS token ids for this batch tile
    emb_ref : (128, 768) bf16   embedding table (VMEM-resident)
    wp_ref  : (768, 768) bf16   pooler dense weight (in, out)
    bp_ref  : (1, 768)   f32    pooler dense bias
    wl_ref  : (768, 128) bf16   classifier weight, zero-padded to 128 lanes
    bl_ref  : (1, 128)   f32    classifier bias, zero-padded to 128 lanes
    out_ref : (Bn, 128)  f32    sigmoid(logits); cols >= CLASSES are filler
    """
    ids = ids_ref[...]                                   # (Bn, 1) int32
    bn = ids.shape[0]

    # Row gather as a one-hot matmul on the MXU (exact: picks bf16 rows,
    # accumulated in f32).  VOCAB == 128 -> one-hot is a single lane-vreg wide.
    onehot = (ids == jax.lax.broadcasted_iota(jnp.int32, (bn, VOCAB), 1)
              ).astype(jnp.bfloat16)                     # (Bn, 128)
    cls = jnp.dot(onehot, emb_ref[...],
                  preferred_element_type=jnp.float32)    # (Bn, 768) f32

    # BERT pooler: tanh(h_cls @ W_p + b_p)  (bf16 MXU matmul, f32 accumulate)
    pooled = jnp.tanh(
        jnp.dot(cls.astype(jnp.bfloat16), wp_ref[...],
                preferred_element_type=jnp.float32)
        + bp_ref[...]
    )

    # nn.Dropout in eval mode is the identity.
    logits = (
        jnp.dot(pooled.astype(jnp.bfloat16), wl_ref[...],
                preferred_element_type=jnp.float32)
        + bl_ref[...]
    )
    out_ref[...] = jax.nn.sigmoid(logits)


def classifier_head(cls_ids, params):
    """Single fused pallas_call: emb[cls_ids] -> pooler -> dropout(id) -> linear -> sigmoid.

    Batch is tiled over a 1-D 'parallel' grid (megacore-shardable, pipelined
    id/out tiles); embedding table and weights use constant index_maps with
    single buffering so they are DMA'd once and stay VMEM-resident.
    Output is lane-dense (128 wide) and sliced to CLASSES in the wrapper.
    """
    n = cls_ids.shape[0]
    block_n = _pick_block_n(n)
    n_pad = _round_up(n, block_n)

    # Only the (tiny) id vector is padded -- no (N, 768) activation copy.
    if n_pad == n:
        ids_p = cls_ids.reshape(n, 1)
    else:
        ids_p = jnp.zeros((n_pad, 1), jnp.int32).at[:n, 0].set(cls_ids)

    const = lambda i: (0, 0)          # resident blocks
    single = pl.Buffered(1)           # never change across the grid -> 1 buffer

    out = pl.pallas_call(
        _head_kernel,
        out_shape=jax.ShapeDtypeStruct((n_pad, LANES), jnp.float32),
        grid=(n_pad // block_n,),
        in_specs=[
            pl.BlockSpec((block_n, 1), lambda i: (i, 0)),
            pl.BlockSpec((VOCAB, HIDDEN), const, pipeline_mode=single),
            pl.BlockSpec((HIDDEN, HIDDEN), const, pipeline_mode=single),
            pl.BlockSpec((1, HIDDEN), const, pipeline_mode=single),
            pl.BlockSpec((HIDDEN, LANES), const, pipeline_mode=single),
            pl.BlockSpec((1, LANES), const, pipeline_mode=single),
        ],
        out_specs=pl.BlockSpec((block_n, LANES), lambda i: (i, 0)),
        compiler_params=pltpu.CompilerParams(
            dimension_semantics=("parallel",)),
    )(ids_p, params["emb"], params["w_pool"], params["b_pool"],
      params["w_lin_p"], params["b_lin_p"])

    return out[:n, :CLASSES]


def classifier_forward(x, mask, params):
    """Mirrors Classifier.forward(x, mask).

    x    : (N, S) int32 token ids
    mask : (N, S) attention mask (consumed only by the encoder)
    """
    del mask  # TODO(synk): attention mask only feeds the untranslated encoder.
    cls_ids = x[:, 0].astype(jnp.int32)   # synthetic encoder = CLS-token lookup
    return classifier_head(cls_ids, params)


def init_params(key):
    """All padding / dtype casts are done once here, not on the hot path."""
    k1, k2, k3, k4, k5 = jax.random.split(key, 5)
    scale_p = 1.0 / jnp.sqrt(HIDDEN)

    emb = (jax.random.normal(k1, (VOCAB, HIDDEN), jnp.float32)
           * 0.02).astype(jnp.bfloat16)
    w_pool = (jax.random.normal(k2, (HIDDEN, HIDDEN), jnp.float32)
              * scale_p).astype(jnp.bfloat16)
    b_pool = (jax.random.normal(k3, (1, HIDDEN), jnp.float32) * 0.01
              ).astype(jnp.float32)

    w_lin = (jax.random.normal(k4, (HIDDEN, CLASSES), jnp.float32)
             * scale_p).astype(jnp.bfloat16)
    b_lin = (jax.random.normal(k5, (1, CLASSES), jnp.float32) * 0.01
             ).astype(jnp.float32)

    # Lane-dense classifier: zero-pad to 128 output columns once at init.
    w_lin_p = jnp.zeros((HIDDEN, LANES), jnp.bfloat16).at[:, :CLASSES].set(w_lin)
    b_lin_p = jnp.zeros((1, LANES), jnp.float32).at[:, :CLASSES].set(b_lin)

    return {
        "emb": emb,
        "w_pool": w_pool,
        "b_pool": b_pool,
        "w_lin_p": w_lin_p,
        "b_lin_p": b_lin_p,
    }


def _reference(x, mask, params):
    """Pure-JAX reference using the same bf16-rounded matmul operands."""
    del mask
    cls_h = params["emb"][x[:, 0]].astype(jnp.float32)        # bf16 rows -> f32
    wp = params["w_pool"].astype(jnp.float32)
    wl = params["w_lin_p"][:, :CLASSES].astype(jnp.float32)
    bl = params["b_lin_p"][:, :CLASSES]
    pooled = jnp.tanh(cls_h @ wp + params["b_pool"])
    pooled = pooled.astype(jnp.bfloat16).astype(jnp.float32)
    return jax.nn.sigmoid(pooled @ wl + bl)


if __name__ == "__main__":
    key = jax.random.PRNGKey(0)
    kp, kx = jax.random.split(key)

    params = init_params(kp)

    N, S = 2, 8
    x = jax.random.randint(kx, (N, S), 0, VOCAB, dtype=jnp.int32)
    mask = jnp.ones((N, S), dtype=jnp.int32)

    logits = classifier_forward(x, mask, params)
    logits = jax.block_until_ready(logits)

    ref = _reference(x, mask, params)
    assert logits.shape == (N, CLASSES)
    assert jnp.allclose(logits, ref, atol=1e-2, rtol=1e-2), "mismatch vs reference"

    print("KERNEL_OK")
</pallas_src>

<mosaic_0001>
module attributes {stable_mosaic.version = 11 : i64} {
  func.func @_head_kernel(%arg0: i32, %arg1: memref<16x1xi32, #tpu.memory_space<vmem>>, %arg2: memref<128x768xbf16, #tpu.memory_space<vmem>>, %arg3: memref<768x768xbf16, #tpu.memory_space<vmem>>, %arg4: memref<1x768xf32, #tpu.memory_space<vmem>>, %arg5: memref<768x128xbf16, #tpu.memory_space<vmem>>, %arg6: memref<1x128xf32, #tpu.memory_space<vmem>>, %arg7: memref<16x128xf32, #tpu.memory_space<vmem>>) attributes {dimension_semantics = [#tpu.dimension_semantics<parallel>], iteration_bounds = array<i64: 1>, scalar_prefetch = 0 : i64, scratch_operands = 0 : i64, tpu.core_type = #tpu.core_type<tc>, window_params = [{transform_indices = @transform_0, window_bounds = array<i64: 16, 1>}, {pipeline_mode = #tpu.pipeline_mode<synchronous>, transform_indices = @transform_1, window_bounds = array<i64: 128, 768>}, {pipeline_mode = #tpu.pipeline_mode<synchronous>, transform_indices = @transform_2, window_bounds = array<i64: 768, 768>}, {pipeline_mode = #tpu.pipeline_mode<synchronous>, transform_indices = @transform_3, window_bounds = array<i64: 1, 768>}, {pipeline_mode = #tpu.pipeline_mode<synchronous>, transform_indices = @transform_4, window_bounds = array<i64: 768, 128>}, {pipeline_mode = #tpu.pipeline_mode<synchronous>, transform_indices = @transform_5, window_bounds = array<i64: 1, 128>}, {transform_indices = @transform_6, window_bounds = array<i64: 16, 128>}]} {
    %c0 = arith.constant 0 : index
    %c0_0 = arith.constant 0 : index
    %0 = vector.load %arg1[%c0, %c0_0] : memref<16x1xi32, #tpu.memory_space<vmem>>, vector<16x1xi32>
    %1 = tpu.iota {dimensions = array<i32: 1>} : vector<16x128xi32>
    %2 = vector.broadcast %0 : vector<16x1xi32> to vector<16x128xi32>
    %3 = arith.cmpi eq, %2, %1 : vector<16x128xi32>
    %4 = arith.extui %3 : vector<16x128xi1> to vector<16x128xi32>
    %5 = arith.sitofp %4 : vector<16x128xi32> to vector<16x128xf32>
    %6 = arith.truncf %5 : vector<16x128xf32> to vector<16x128xbf16>
    %c0_1 = arith.constant 0 : index
    %c0_2 = arith.constant 0 : index
    %7 = vector.load %arg2[%c0_1, %c0_2] : memref<128x768xbf16, #tpu.memory_space<vmem>>, vector<128x768xbf16>
    %cst = arith.constant dense<0.000000e+00> : vector<16x768xf32>
    %8 = tpu.matmul %6, %7, %cst {dimension_numbers = #tpu.dot_dimension_numbers<[1], [0], [0], [1], [0, 0, 1, 1], [], []>} : vector<16x128xbf16>, vector<128x768xbf16>, vector<16x768xf32> -> vector<16x768xf32>
    %9 = arith.truncf %8 : vector<16x768xf32> to vector<16x768xbf16>
    %c0_3 = arith.constant 0 : index
    %c0_4 = arith.constant 0 : index
    %10 = vector.load %arg3[%c0_3, %c0_4] : memref<768x768xbf16, #tpu.memory_space<vmem>>, vector<768x768xbf16>
    %cst_5 = arith.constant dense<0.000000e+00> : vector<16x768xf32>
    %11 = tpu.matmul %9, %10, %cst_5 {dimension_numbers = #tpu.dot_dimension_numbers<[1], [0], [0], [1], [0, 0, 1, 1], [], []>} : vector<16x768xbf16>, vector<768x768xbf16>, vector<16x768xf32> -> vector<16x768xf32>
    %c0_6 = arith.constant 0 : index
    %c0_7 = arith.constant 0 : index
    %12 = vector.load %arg4[%c0_6, %c0_7] : memref<1x768xf32, #tpu.memory_space<vmem>>, vector<1x768xf32>
    %13 = vector.broadcast %12 : vector<1x768xf32> to vector<16x768xf32>
    %14 = arith.addf %11, %13 : vector<16x768xf32>
    %15 = math.tanh %14 : vector<16x768xf32>
    %16 = arith.truncf %15 : vector<16x768xf32> to vector<16x768xbf16>
    %c0_8 = arith.constant 0 : index
    %c0_9 = arith.constant 0 : index
    %17 = vector.load %arg5[%c0_8, %c0_9] : memref<768x128xbf16, #tpu.memory_space<vmem>>, vector<768x128xbf16>
    %cst_10 = arith.constant dense<0.000000e+00> : vector<16x128xf32>
    %18 = tpu.matmul %16, %17, %cst_10 {dimension_numbers = #tpu.dot_dimension_numbers<[1], [0], [0], [1], [0, 0, 1, 1], [], []>} : vector<16x768xbf16>, vector<768x128xbf16>, vector<16x128xf32> -> vector<16x128xf32>
    %c0_11 = arith.constant 0 : index
    %c0_12 = arith.constant 0 : index
    %19 = vector.load %arg6[%c0_11, %c0_12] : memref<1x128xf32, #tpu.memory_space<vmem>>, vector<1x128xf32>
    %20 = vector.broadcast %19 : vector<1x128xf32> to vector<16x128xf32>
    %21 = arith.addf %18, %20 : vector<16x128xf32>
    %22 = arith.negf %21 : vector<16x128xf32>
    %23 = math.exp %22 : vector<16x128xf32>
    %cst_13 = arith.constant 1.000000e+00 : f32
    %24 = vector.broadcast %cst_13 : f32 to vector<16x128xf32>
    %25 = arith.addf %24, %23 : vector<16x128xf32>
    %26 = arith.divf %24, %25 : vector<16x128xf32>
    %c0_14 = arith.constant 0 : index
    %c0_15 = arith.constant 0 : index
    %27 = vector.load %arg7[%c0_14, %c0_15] : memref<16x128xf32, #tpu.memory_space<vmem>>, vector<16x128xf32>
    tpu.vector_store %arg7[%c0_14, %c0_15], %26 {strides = array<i32>} : memref<16x128xf32, #tpu.memory_space<vmem>>, vector<16x128xf32>,
    return
  }
  func.func @transform_0(%arg0: i32) -> (i32, i32) {
    %c0_i32 = arith.constant 0 : i32
    %c0_i32_0 = arith.constant 0 : i32
    return %arg0, %c0_i32 : i32, i32
  }
  func.func @transform_1(%arg0: i32) -> (i32, i32) {
    %c0_i32 = arith.constant 0 : i32
    %c0_i32_0 = arith.constant 0 : i32
    %c0_i32_1 = arith.constant 0 : i32
    return %c0_i32, %c0_i32_0 : i32, i32
  }
  func.func @transform_2(%arg0: i32) -> (i32, i32) {
    %c0_i32 = arith.constant 0 : i32
    %c0_i32_0 = arith.constant 0 : i32
    %c0_i32_1 = arith.constant 0 : i32
    return %c0_i32, %c0_i32_0 : i32, i32
  }
  func.func @transform_3(%arg0: i32) -> (i32, i32) {
    %c0_i32 = arith.constant 0 : i32
    %c0_i32_0 = arith.constant 0 : i32
    %c0_i32_1 = arith.constant 0 : i32
    return %c0_i32, %c0_i32_0 : i32, i32
  }
  func.func @transform_4(%arg0: i32) -> (i32, i32) {
    %c0_i32 = arith.constant 0 : i32
    %c0_i32_0 = arith.constant 0 : i32
    %c0_i32_1 = arith.constant 0 : i32
    return %c0_i32, %c0_i32_0 : i32, i32
  }
  func.func @transform_5(%arg0: i32) -> (i32, i32) {
    %c0_i32 = arith.constant 0 : i32
    %c0_i32_0 = arith.constant 0 : i32
    %c0_i32_1 = arith.constant 0 : i32
    return %c0_i32, %c0_i32_0 : i32, i32
  }
  func.func @transform_6(%arg0: i32) -> (i32, i32) {
    %c0_i32 = arith.constant 0 : i32
    %c0_i32_0 = arith.constant 0 : i32
    return %arg0, %c0_i32 : i32, i32
  }
}

</mosaic_0001>

<bundles_post_ra>
// kernel: tpu_custom_call.1
= control target key start
LH: loop header
LB: loop body
LE: loop exit
PB: predicated region body
PF: predicated region fallthrough
CT: control target
= control target key end

     0   :  { %11 = vsyncpa [#allocation3], 0  ;;  %s4682_s0 = inlined_call_operand.vmem [shape: s32[16,1], index: 0, kind: input, shape index: {}]   ;;  %s4683_s1 = inlined_call_operand.hbm [shape: bf16[128,768], index: 1, kind: input, shape index: {}]   ;;  %s4684_s2 = inlined_call_operand.hbm [shape: bf16[768,768], index: 2, kind: input, shape index: {}]   ;;  %s4685_s3 = inlined_call_operand.hbm [shape: f32[1,768], index: 3, kind: input, shape index: {}]   ;;  %s4686_s4 = inlined_call_operand.hbm [shape: bf16[768,128], index: 4, kind: input, shape index: {}]   ;;  %s4687_s5 = inlined_call_operand.hbm [shape: f32[1,128], index: 5, kind: input, shape index: {}]   ;;  %s4688_s6 = inlined_call_operand.hbm [shape: f32[16,128], index: 6, kind: output, shape index: {}]  }
   0x1   :  { %12 = vsyncpa [#allocation6], 0 }
   0x2   :  { %13 = vsyncpa [#allocation9], 0 }
   0x3   :  { %14 = vsyncpa [#allocation4], 0  ;;  %s4477_s21 = smov [#allocation5]   ;;  %s4478_s23 = smov [#allocation8]  }
   0x4   :  { %s34_s22 = sshll.u32 %s4477_s21, 4  ;;  %s56_s24 = sshll.u32 %s4478_s23, 4  ;;  %s35_s22 = int_to_ptr.vmem [resolvable:$true] %s34_s22  ;;  %s4526_s24 = int_to_ptr.vmem [resolvable:$true] %s56_s24 }
   0x5   :  { %s4337_s27 = scalar_lea.hbm %s4684_s2, 36864 }
   0x6   :  { %p4338_p0 = scmp.ne.s32.totalorder %s4684_s2, %s4337_s27  ;;  %p4341_p1 = scmp.lt.u32.totalorder %s4337_s27, %s4684_s2 }
   0x8   :  { %p4343_p2 = pnand %p4341_p1, %p4338_p0 }
   0xa   :  { %4346 = shalt.err (!%p4343_p2)
}
   0xb   :  { %s4347_s8 = scalar_lea.vmem %s35_s22, 36864  ;;  %p4352_p4 = scmp.lt.s32.totalorder %s35_s22, %s35_s22 }
   0xc   :  { %p4348_p3 = scmp.ne.s32.totalorder %s35_s22, %s4347_s8  ;;  %p4353_p5 = scmp.lt.s32.totalorder %s4347_s8, %s4347_s8 }
   0xe   :  { %p4354_p6 = por %p4353_p5, %p4352_p4 }
  0x10   :  { %p4355_p7 = pnand %p4354_p6, %p4348_p3 }
  0x12   :  { %4358 = shalt.err (!%p4355_p7)
}
  0x13   :  { %s4479_s9 = smov 384   ;;  %s4480_s10 = smov 24  }
  0x14   :  { %40 = dma.hbm_to_vmem [thread:$0]  %s4684_s2, 36864, %s35_s22, [#allocation6], %s4479_s9, %s4479_s9, %s4480_s10  }
  0x15   :  { %s4359_s15 = scalar_lea.hbm %s4686_s4, 6144 }
  0x16   :  { %p4360_p8 = scmp.ne.s32.totalorder %s4686_s4, %s4359_s15  ;;  %p4363_p9 = scmp.lt.u32.totalorder %s4359_s15, %s4686_s4 }
  0x18   :  { %p4365_p10 = pnand %p4363_p9, %p4360_p8 }
  0x1a   :  { %4368 = shalt.err (!%p4365_p10)
}
  0x1b   :  { %s4369_s20 = scalar_lea.vmem %s4526_s24, 6144  ;;  %p4374_p12 = scmp.lt.s32.totalorder %s4526_s24, %s4526_s24 }
  0x1c   :  { %p4370_p11 = scmp.ne.s32.totalorder %s4526_s24, %s4369_s20  ;;  %p4375_p13 = scmp.lt.s32.totalorder %s4369_s20, %s4369_s20 }
  0x1e   :  { %p4376_p0 = por %p4375_p13, %p4374_p12 }
  0x20   :  { %p4377_p1 = pnand %p4376_p0, %p4370_p11 }
  0x22   :  { %4380 = shalt.err (!%p4377_p1)
}
  0x23   :  { %s4481_s2 = smov 64   ;;  %s4482_s21 = smov 4  }
  0x24   :  { %62 = dma.hbm_to_vmem [thread:$0]  %s4686_s4, 6144, %s4526_s24, [#allocation9], %s4481_s2, %s4481_s2, %s4482_s21  }
  0x25   :  { %s4483_s25 = smov [#allocation2]   ;;  %s4484_s27 = smov [#allocation7]  }
  0x26   :  { %s22_s26 = sshll.u32 %s4483_s25, 4  ;;  %s47_s28 = sshll.u32 %s4484_s27, 4  ;;  %s23_s26 = int_to_ptr.vmem [resolvable:$true] %s22_s26  ;;  %s48_s28 = int_to_ptr.vmem [resolvable:$true] %s47_s28 }
  0x27   :  { %s4381_s7 = scalar_lea.hbm %s4683_s1, 6144 }
  0x28   :  { %p4382_p2 = scmp.ne.s32.totalorder %s4683_s1, %s4381_s7  ;;  %p4385_p3 = scmp.lt.u32.totalorder %s4381_s7, %s4683_s1 }
  0x2a   :  { %p4387_p4 = pnand %p4385_p3, %p4382_p2 }
  0x2c   :  { %4390 = shalt.err (!%p4387_p4)
}
  0x2d   :  { %s4391_s4 = scalar_lea.vmem %s23_s26, 6144  ;;  %p4396_p6 = scmp.lt.s32.totalorder %s23_s26, %s23_s26 }
  0x2e   :  { %p4392_p5 = scmp.ne.s32.totalorder %s23_s26, %s4391_s4  ;;  %p4397_p7 = scmp.lt.s32.totalorder %s4391_s4, %s4391_s4 }
  0x30   :  { %p4398_p8 = por %p4397_p7, %p4396_p6 }
  0x32   :  { %p4399_p9 = pnand %p4398_p8, %p4392_p5 }
  0x34   :  { %4402 = shalt.err (!%p4399_p9)
}
  0x35   :  { %28 = dma.hbm_to_vmem [thread:$0]  %s4683_s1, 6144, %s23_s26, [#allocation3], %s4479_s9, %s4479_s9, %s4480_s10  }
  0x36   :  { %s4403_s17 = scalar_lea.hbm %s4685_s3, 96 }
  0x37   :  { %p4404_p10 = scmp.ne.s32.totalorder %s4685_s3, %s4403_s17  ;;  %p4407_p11 = scmp.lt.u32.totalorder %s4403_s17, %s4685_s3 }
  0x39   :  { %p4409_p12 = pnand %p4407_p11, %p4404_p10 }
  0x3b   :  { %4412 = shalt.err (!%p4409_p12)
}
  0x3c   :  { %s4413_s21 = scalar_lea.vmem %s48_s28, 96  ;;  %p4418_p0 = scmp.lt.s32.totalorder %s48_s28, %s48_s28 }
  0x3d   :  { %p4414_p13 = scmp.ne.s32.totalorder %s48_s28, %s4413_s21  ;;  %p4419_p1 = scmp.lt.s32.totalorder %s4413_s21, %s4413_s21 }
  0x3f   :  { %p4420_p2 = por %p4419_p1, %p4418_p0 }
  0x41   :  { %p4421_p3 = pnand %p4420_p2, %p4414_p13 }
  0x43   :  { %4424 = shalt.err (!%p4421_p3)
}
  0x44   :  { %50 = dma.hbm_to_vmem [thread:$0]  %s4685_s3, 96, %s48_s28, [#allocation6]  }
  0x45   :  { %s4485_s10 = smov [#allocation10]   ;;  %s4425_s26 = scalar_lea.hbm %s4687_s5, 16 }
  0x46   :  { %s69_s22 = sshll.u32 %s4485_s10, 4  ;;  %p4426_p4 = scmp.ne.s32.totalorder %s4687_s5, %s4425_s26  ;;  %s70_s22 = int_to_ptr.vmem [resolvable:$true] %s69_s22 }
  0x47   :  { %p4429_p5 = scmp.lt.u32.totalorder %s4425_s26, %s4687_s5 }
  0x49   :  { %p4431_p6 = pnand %p4429_p5, %p4426_p4 }
  0x4b   :  { %4434 = shalt.err (!%p4431_p6)
}
  0x4c   :  { %s4435_s8 = scalar_lea.vmem %s70_s22, 16  ;;  %s4439_s3 = scalar_lea.vmem %s70_s22, 32 }
  0x4d   :  { %p4436_p7 = scmp.ne.s32.totalorder %s70_s22, %s4435_s8  ;;  %p4440_p8 = scmp.lt.s32.totalorder %s70_s22, %s70_s22 }
  0x4e   :  { %p4441_p9 = scmp.lt.s32.totalorder %s4439_s3, %s4435_s8 }
  0x50   :  { %p4442_p10 = por %p4441_p9, %p4440_p8 }
  0x52   :  { %p4443_p11 = pnand %p4442_p10, %p4436_p7 }
  0x54   :  { %4446 = shalt.err (!%p4443_p11)
}
  0x55   :  { %72 = dma.hbm_to_vmem [thread:$0]  %s4687_s5, 16, %s70_s22, [#allocation9]  }
  0x56   :  { %4469 = dma.done.wait [#allocation3], 6144  }
  0x57   :  { %4470 = vsyncadd [#allocation3], 4294961152 }
  0x58   :  { %4471 = dma.done.wait [#allocation6], 36960  }
  0x59   :  { %4472 = vsyncadd [#allocation6], 4294930336 }
  0x5a   :  { %4473 = dma.done.wait [#allocation9], 6160  }
  0x5b   :  { %4474 = vsyncadd [#allocation9], 4294961136  ;;  %v4486_v0 = vmov 0   ;;  %v89_v1 = vld [vmem:[%s4682_s0] sm:$0xff]  ;;  %v90_v2 = vld [vmem:[%s4682_s0 + $0x8] sm:$0xff]  ;;  %v91_v49 = vlaneseq  ;;  %s4488_s0 = smov [#allocation11]  }
  0x5c   :  { %3752 = vset.pattern.permute.xlu0 %v4486_v0  ;;  %426 = vmatprep.mubr.bf16.mxu0 %v4486_v0  ;;  %v3753_v3 = vld [vmem:[#allocation2 + $0x4] ss:$24 sps:$4 sm:$0xff]   ;;  %v3755_v4 = vld [vmem:[#allocation2] ss:$24 sps:$4 sm:$0xff]   ;;  %v3756_v5 = vld [vmem:[#allocation2 + $0x34] ss:$24 sps:$4 sm:$0xff]  }
  0x5d   :  { %94 = vperm.xlu0 %3752, %v89_v1   ;;  %394 = vmatprep.subr.bf16.mxu0 %v3753_v3  ;;  %v3758_v6 = vld [vmem:[#allocation2 + $0x30] ss:$24 sps:$4 sm:$0xff]   ;;  %v3759_v7 = vld [vmem:[#allocation2 + $0x64] ss:$24 sps:$4 sm:$0xff]   ;;  %v3761_v8 = vld [vmem:[#allocation2 + $0x60] ss:$24 sps:$4 sm:$0xff]  }
  0x5e   :  { %395 = vmatpush1.bf16.msra.mxu0 %v3755_v4  ;;  %v3762_v9 = vld [vmem:[#allocation2 + $0x94] ss:$24 sps:$4 sm:$0xff]   ;;  %v3764_v10 = vld [vmem:[#allocation2 + $0x90] ss:$24 sps:$4 sm:$0xff]   ;;  %v3765_v11 = vld [vmem:[#allocation2 + $0xc4] ss:$24 sps:$4 sm:$0xff]  }
  0x5f   :  { %396 = vmatprep.subr.bf16.mxu0 %v3756_v5  ;;  %v3767_v12 = vld [vmem:[#allocation2 + $0xc0] ss:$24 sps:$4 sm:$0xff]   ;;  %v3768_v13 = vld [vmem:[#allocation2 + $0xf4] ss:$24 sps:$4 sm:$0xff]   ;;  %v3770_v14 = vld [vmem:[#allocation2 + $0xf0] ss:$24 sps:$4 sm:$0xff]  }
  0x60   :  { %v3771_v15 = vld [vmem:[#allocation2 + $0x124] ss:$24 sps:$4 sm:$0xff]   ;;  %v3773_v16 = vld [vmem:[#allocation2 + $0x120] ss:$24 sps:$4 sm:$0xff]   ;;  %v3774_v17 = vld [vmem:[#allocation2 + $0x154] ss:$24 sps:$4 sm:$0xff]  }
  0x61   :  { %97 = vperm.xlu0 %3752, %v90_v2   ;;  %v3776_v18 = vld [vmem:[#allocation2 + $0x150] ss:$24 sps:$4 sm:$0xff]   ;;  %v3779_v19 = vld [vmem:[#allocation2 + $0xc] ss:$24 sps:$4 sm:$0xff]   ;;  %v3830_v21 = vld [vmem:[#allocation5] ss:$24 sps:$4 sm:$0xff]  }
  0x62   :  { %397 = vmatpush1.bf16.msra.mxu0 %v3758_v6  ;;  %v3825_v20 = vld [vmem:[#allocation5 + $0x4] ss:$24 sps:$4 sm:$0xff]   ;;  %v3831_v22 = vld [vmem:[#allocation5 + $0x34] ss:$24 sps:$4 sm:$0xff]   ;;  %v3836_v23 = vld [vmem:[#allocation5 + $0x30] ss:$24 sps:$4 sm:$0xff]  }
  0x63   :  { %398 = vmatprep.subr.bf16.mxu0 %v3759_v7  ;;  %2289 = vmatprep.subr.bf16.mxu1 %v3825_v20  ;;  %v3837_v24 = vld [vmem:[#allocation5 + $0x64] ss:$24 sps:$4 sm:$0xff]   ;;  %v3842_v25 = vld [vmem:[#allocation5 + $0x60] ss:$24 sps:$4 sm:$0xff]   ;;  %v3843_v26 = vld [vmem:[#allocation5 + $0x94] ss:$24 sps:$4 sm:$0xff]  }
  0x64   :  { %2290 = vmatpush1.bf16.msra.mxu1 %v3830_v21  ;;  %v3848_v27 = vld [vmem:[#allocation5 + $0x90] ss:$24 sps:$4 sm:$0xff]   ;;  %v3849_v28 = vld [vmem:[#allocation5 + $0xc4] ss:$24 sps:$4 sm:$0xff]   ;;  %v3854_v29 = vld [vmem:[#allocation5 + $0xc0] ss:$24 sps:$4 sm:$0xff]  }
  0x65   :  { %2291 = vmatprep.subr.bf16.mxu1 %v3831_v22  ;;  %v3855_v30 = vld [vmem:[#allocation5 + $0xf4] ss:$24 sps:$4 sm:$0xff]   ;;  %v3860_v31 = vld [vmem:[#allocation5 + $0xf0] ss:$24 sps:$4 sm:$0xff]   ;;  %v3861_v32 = vld [vmem:[#allocation5 + $0x124] ss:$24 sps:$4 sm:$0xff]  }
  0x66   :  { %399 = vmatpush1.bf16.msra.mxu0 %v3761_v8  ;;  %v3866_v33 = vld [vmem:[#allocation5 + $0x120] ss:$24 sps:$4 sm:$0xff]   ;;  %v3867_v34 = vld [vmem:[#allocation5 + $0x154] ss:$24 sps:$4 sm:$0xff]   ;;  %v3872_v35 = vld [vmem:[#allocation5 + $0x150] ss:$24 sps:$4 sm:$0xff]  }
  0x67   :  { %400 = vmatprep.subr.bf16.mxu0 %v3762_v9  ;;  %v3873_v36 = vld [vmem:[#allocation5 + $0x184] ss:$24 sps:$4 sm:$0xff]   ;;  %v3878_v37 = vld [vmem:[#allocation5 + $0x180] ss:$24 sps:$4 sm:$0xff]   ;;  %v3879_v38 = vld [vmem:[#allocation5 + $0x1b4] ss:$24 sps:$4 sm:$0xff]  }
  0x68   :  { %2292 = vmatpush1.bf16.msra.mxu1 %v3836_v23  ;;  %v3884_v39 = vld [vmem:[#allocation5 + $0x1b0] ss:$24 sps:$4 sm:$0xff]   ;;  %v3885_v40 = vld [vmem:[#allocation5 + $0x1e4] ss:$24 sps:$4 sm:$0xff]   ;;  %v3890_v41 = vld [vmem:[#allocation5 + $0x1e0] ss:$24 sps:$4 sm:$0xff]  }
  0x69   :  { %2293 = vmatprep.subr.bf16.mxu1 %v3837_v24  ;;  %v3891_v42 = vld [vmem:[#allocation5 + $0x214] ss:$24 sps:$4 sm:$0xff]   ;;  %v3896_v43 = vld [vmem:[#allocation5 + $0x210] ss:$24 sps:$4 sm:$0xff]   ;;  %v3897_v44 = vld [vmem:[#allocation5 + $0x244] ss:$24 sps:$4 sm:$0xff]  }
  0x6a   :  { %401 = vmatpush1.bf16.msra.mxu0 %v3764_v10  ;;  %v3902_v45 = vld [vmem:[#allocation5 + $0x240] ss:$24 sps:$4 sm:$0xff]   ;;  %v3903_v46 = vld [vmem:[#allocation5 + $0x274] ss:$24 sps:$4 sm:$0xff]   ;;  %v3908_v47 = vld [vmem:[#allocation5 + $0x270] ss:$24 sps:$4 sm:$0xff]  }
  0x6b   :  { %402 = vmatprep.subr.bf16.mxu0 %v3765_v11  ;;  %v3909_v48 = vld [vmem:[#allocation5 + $0x2a4] ss:$24 sps:$4 sm:$0xff]   ;;  %v3914_v50 = vld [vmem:[#allocation5 + $0x2a0] ss:$24 sps:$4 sm:$0xff]   ;;  %v92_v52 = vand.u32 127, %v91_v49  ;;  %s3227_s5 = sshll.u32 %s4488_s0, 4  ;;  %s3228_s5 = int_to_ptr.vmem [resolvable:$true] %s3227_s5 }
  0x6c   :  { %2294 = vmatpush1.bf16.msra.mxu1 %v3842_v25  ;;  %v3777_v53 = vld [vmem:[#allocation2 + $0x8] ss:$24 sps:$4 sm:$0xff]   ;;  %v3782_v54 = vld [vmem:[#allocation2 + $0x3c] ss:$24 sps:$4 sm:$0xff]   ;;  %v3780_v57 = vld [vmem:[#allocation2 + $0x38] ss:$24 sps:$4 sm:$0xff]   ;;  %p4452_p13 = scmp.lt.s32.totalorder %s3228_s5, %s3228_s5 }
  0x6d   :  { %2295 = vmatprep.subr.bf16.mxu1 %v3843_v26  ;;  %v4487_v58 = vmov 1.0|1.0   ;;  %v3785_v59 = vld [vmem:[#allocation2 + $0x6c] ss:$24 sps:$4 sm:$0xff]   ;;  %v3783_v60 = vld [vmem:[#allocation2 + $0x68] ss:$24 sps:$4 sm:$0xff]  }
  0x6e   :  { %403 = vmatpush1.bf16.msra.mxu0 %v3767_v12  ;;  %v3788_v61 = vld [vmem:[#allocation2 + $0x9c] ss:$24 sps:$4 sm:$0xff]   ;;  %v3786_v62 = vld [vmem:[#allocation2 + $0x98] ss:$24 sps:$4 sm:$0xff]   ;;  %v3791_v63 = vld [vmem:[#allocation2 + $0xcc] ss:$24 sps:$4 sm:$0xff]  }
  0x6f   :  { %404 = vmatprep.subr.bf16.mxu0 %v3768_v13  ;;  %v3789_v1 = vld [vmem:[#allocation2 + $0xc8] ss:$24 sps:$4 sm:$0xff]   ;;  %v3794_v2 = vld [vmem:[#allocation2 + $0xfc] ss:$24 sps:$4 sm:$0xff]   ;;  %v3792_v3 = vld [vmem:[#allocation2 + $0xf8] ss:$24 sps:$4 sm:$0xff]  }
  0x70   :  { %2296 = vmatpush1.bf16.msra.mxu1 %v3848_v27  ;;  %v3797_v4 = vld [vmem:[#allocation2 + $0x12c] ss:$24 sps:$4 sm:$0xff]   ;;  %v3795_v5 = vld [vmem:[#allocation2 + $0x128] ss:$24 sps:$4 sm:$0xff]   ;;  %v3800_v6 = vld [vmem:[#allocation2 + $0x15c] ss:$24 sps:$4 sm:$0xff]  }
  0x71   :  { %2297 = vmatprep.subr.bf16.mxu1 %v3849_v28  ;;  %v3798_v7 = vld [vmem:[#allocation2 + $0x158] ss:$24 sps:$4 sm:$0xff]   ;;  %v3803_v8 = vld [vmem:[#allocation2 + $0x14] ss:$24 sps:$4 sm:$0xff]   ;;  %v3806_v10 = vld [vmem:[#allocation2 + $0x44] ss:$24 sps:$4 sm:$0xff]  }
  0x72   :  { %405 = vmatpush1.bf16.msra.mxu0 %v3770_v14  ;;  %v3801_v9 = vld [vmem:[#allocation2 + $0x10] ss:$24 sps:$4 sm:$0xff]   ;;  %v3804_v11 = vld [vmem:[#allocation2 + $0x40] ss:$24 sps:$4 sm:$0xff]   ;;  %v3809_v12 = vld [vmem:[#allocation2 + $0x74] ss:$24 sps:$4 sm:$0xff]  }
  0x73   :  { %406 = vmatprep.subr.bf16.mxu0 %v3771_v15  ;;  %v3807_v13 = vld [vmem:[#allocation2 + $0x70] ss:$24 sps:$4 sm:$0xff]   ;;  %v3812_v14 = vld [vmem:[#allocation2 + $0xa4] ss:$24 sps:$4 sm:$0xff]   ;;  %v3810_v15 = vld [vmem:[#allocation2 + $0xa0] ss:$24 sps:$4 sm:$0xff]  }
  0x74   :  { %2298 = vmatpush1.bf16.msra.mxu1 %v3854_v29  ;;  %v3821_v20 = vld [vmem:[#allocation2 + $0x134] ss:$24 sps:$4 sm:$0xff]   ;;  %v3819_v21 = vld [vmem:[#allocation2 + $0x130] ss:$24 sps:$4 sm:$0xff]   ;;  %v3822_v22 = vld [vmem:[#allocation2 + $0x160] ss:$24 sps:$4 sm:$0xff]  }
  0x75   :  { %2299 = vmatprep.subr.bf16.mxu1 %v3855_v30  ;;  %v3829_v23 = vld [vmem:[#allocation5 + $0xc] ss:$24 sps:$4 sm:$0xff]   ;;  %v3827_v24 = vld [vmem:[#allocation5 + $0x8] ss:$24 sps:$4 sm:$0xff]   ;;  %v3835_v25 = vld [vmem:[#allocation5 + $0x3c] ss:$24 sps:$4 sm:$0xff]  }
  0x76   :  { %407 = vmatpush1.bf16.msra.mxu0 %v3773_v16  ;;  %v3815_v16 = vld [vmem:[#allocation2 + $0xd4] ss:$24 sps:$4 sm:$0xff]   ;;  %v3833_v26 = vld [vmem:[#allocation5 + $0x38] ss:$24 sps:$4 sm:$0xff]   ;;  %v3839_v28 = vld [vmem:[#allocation5 + $0x68] ss:$24 sps:$4 sm:$0xff]  }
  0x77   :  { %408 = vmatprep.subr.bf16.mxu0 %v3774_v17  ;;  %v3813_v17 = vld [vmem:[#allocation2 + $0xd0] ss:$24 sps:$4 sm:$0xff]   ;;  %v3841_v27 = vld [vmem:[#allocation5 + $0x6c] ss:$24 sps:$4 sm:$0xff]   ;;  %v3847_v29 = vld [vmem:[#allocation5 + $0x9c] ss:$24 sps:$4 sm:$0xff]  }
  0x78   :  { %2300 = vmatpush1.bf16.msra.mxu1 %v3860_v31  ;;  %v3845_v30 = vld [vmem:[#allocation5 + $0x98] ss:$24 sps:$4 sm:$0xff]   ;;  %v3853_v31 = vld [vmem:[#allocation5 + $0xcc] ss:$24 sps:$4 sm:$0xff]   ;;  %v3911_v56 = vld [vmem:[#allocation5 + $0x2a8] ss:$24 sps:$4 sm:$0xff]  }
  0x79   :  { %2301 = vmatprep.subr.bf16.mxu1 %v3861_v32  ;;  %v3851_v32 = vld [vmem:[#allocation5 + $0xc8] ss:$24 sps:$4 sm:$0xff]   ;;  %s4447_s14 = scalar_lea.vmem %s3228_s5, 256 }
  0x7a   :  { %409 = vmatpush1.bf16.msra.mxu0 %v3776_v18  ;;  %v3818_v18 = vld [vmem:[#allocation2 + $0x104] ss:$24 sps:$4 sm:$0xff]   ;;  %p4448_p12 = scmp.ne.s32.totalorder %s3228_s5, %s4447_s14  ;;  %p4453_p0 = scmp.lt.s32.totalorder %s4447_s14, %s4447_s14 }
  0x7b   :  { %437 = vmatprep.subr.bf16.mxu0 %v3779_v19  ;;  %v3816_v19 = vld [vmem:[#allocation2 + $0x100] ss:$24 sps:$4 sm:$0xff]  }
  0x7c   :  { %2302 = vmatpush1.bf16.msra.mxu1 %v3866_v33  ;;  %v3859_v33 = vld [vmem:[#allocation5 + $0xfc] ss:$24 sps:$4 sm:$0xff]   ;;  %p4454_p1 = por %p4453_p0, %p4452_p13 }
  0x7d   :  { %2303 = vmatprep.subr.bf16.mxu1 %v3867_v34  ;;  %v3857_v34 = vld [vmem:[#allocation5 + $0xf8] ss:$24 sps:$4 sm:$0xff]  }
  0x7e   :  { %p4455_p2 = pnand %p4454_p1, %p4448_p12 }
  0x80   :  { %2304 = vmatpush1.bf16.msra.mxu1 %v3872_v35  ;;  %v3865_v35 = vld [vmem:[#allocation5 + $0x12c] ss:$24 sps:$4 sm:$0xff]  }
  0x81   :  { %2305 = vmatprep.subr.bf16.mxu1 %v3873_v36  ;;  %v3915_v36 = vld [vmem:[#allocation5 + $0x2d4] ss:$24 sps:$4 sm:$0xff]  }
  0x84   :  { %2306 = vmatpush1.bf16.msra.mxu1 %v3878_v37  ;;  %v3863_v37 = vld [vmem:[#allocation5 + $0x128] ss:$24 sps:$4 sm:$0xff]  }
  0x85   :  { %2307 = vmatprep.subr.bf16.mxu1 %v3879_v38  ;;  %v3920_v38 = vld [vmem:[#allocation5 + $0x2d0] ss:$24 sps:$4 sm:$0xff]  }
  0x88   :  { %2308 = vmatpush1.bf16.msra.mxu1 %v3884_v39  ;;  %v3871_v39 = vld [vmem:[#allocation5 + $0x15c] ss:$24 sps:$4 sm:$0xff]  }
  0x89   :  { %2309 = vmatprep.subr.bf16.mxu1 %v3885_v40  ;;  %v3923_v40 = vld [vmem:[#allocation5 + $0x304] ss:$24 sps:$4 sm:$0xff]  }
  0x8c   :  { %2310 = vmatpush1.bf16.msra.mxu1 %v3890_v41  ;;  %v3869_v41 = vld [vmem:[#allocation5 + $0x158] ss:$24 sps:$4 sm:$0xff]  }
  0x8d   :  { %2311 = vmatprep.subr.bf16.mxu1 %v3891_v42  ;;  %v3877_v42 = vld [vmem:[#allocation5 + $0x18c] ss:$24 sps:$4 sm:$0xff]  }
  0x90   :  { %2312 = vmatpush1.bf16.msra.mxu1 %v3896_v43  ;;  %v3875_v43 = vld [vmem:[#allocation5 + $0x188] ss:$24 sps:$4 sm:$0xff]  }
  0x91   :  { %2313 = vmatprep.subr.bf16.mxu1 %v3897_v44  ;;  %v3883_v44 = vld [vmem:[#allocation5 + $0x1bc] ss:$24 sps:$4 sm:$0xff]  }
  0x94   :  { %2314 = vmatpush1.bf16.msra.mxu1 %v3902_v45  ;;  %v3881_v45 = vld [vmem:[#allocation5 + $0x1b8] ss:$24 sps:$4 sm:$0xff]  }
  0x95   :  { %2315 = vmatprep.subr.bf16.mxu1 %v3903_v46  ;;  %v3889_v46 = vld [vmem:[#allocation5 + $0x1ec] ss:$24 sps:$4 sm:$0xff]  }
  0x98   :  { %2316 = vmatpush1.bf16.msra.mxu1 %v3908_v47  ;;  %v3887_v47 = vld [vmem:[#allocation5 + $0x1e8] ss:$24 sps:$4 sm:$0xff]  }
  0x99   :  { %2317 = vmatprep.subr.bf16.mxu1 %v3909_v48  ;;  %v3895_v48 = vld [vmem:[#allocation5 + $0x21c] ss:$24 sps:$4 sm:$0xff]  }
  0x9c   :  { %2318 = vmatpush1.bf16.msra.mxu1 %v3914_v50  ;;  %v3893_v50 = vld [vmem:[#allocation5 + $0x218] ss:$24 sps:$4 sm:$0xff]  }
  0x9d   :  { %2319 = vmatprep.subr.bf16.mxu1 %v3915_v36 }
  0xa0   :  { %2320 = vmatpush1.bf16.msra.mxu1 %v3920_v38 }
  0xa1   :  { %2332 = vmatprep.subr.bf16.mxu1 %v3923_v40  ;;  %v3969_v40 = vld [vmem:[#allocation5 + $0x480] ss:$24 sps:$4 sm:$0xff]  }
  0xdc   :  { %v95_v51 = vpop.permute.xlu0 %94 }
  0xdd   :  { %vm99_vm0 = vcmp.eq.s32.totalorder %v95_v51, %v92_v52  ;;  %v3901_v51 = vld [vmem:[#allocation5 + $0x24c] ss:$24 sps:$4 sm:$0xff]  }
  0xe0   :  { %v98_v55 = vpop.permute.xlu0 %97 }
  0xe1   :  { %vm100_vm1 = vcmp.eq.s32.totalorder %v98_v55, %v92_v52  ;;  %v3899_v52 = vld [vmem:[#allocation5 + $0x248] ss:$24 sps:$4 sm:$0xff]   ;;  %v3913_v55 = vld [vmem:[#allocation5 + $0x2ac] ss:$24 sps:$4 sm:$0xff]  }
  0xe2   :  { %vm4608_vm2 = vmpackc.low %vm100_vm1, %vm99_vm0 }
  0xe3   :  { %3292 = vmatmul.mubr.msk.bf16.vlgmr.msra.gmra.mrb[0].mxu0 %vm4608_vm2, %v4487_v58 }
  0xe4   :  { %438 = vmatpush1.bf16.msra.mxu0 %v3777_v53  ;;  %469 = vmatprep.mubr.bf16.mxu0 %v4486_v0  ;;  %v3907_v53 = vld [vmem:[#allocation5 + $0x27c] ss:$24 sps:$4 sm:$0xff]  }
  0xe5   :  { %439 = vmatprep.subr.bf16.mxu0 %v3782_v54  ;;  %v3905_v54 = vld [vmem:[#allocation5 + $0x278] ss:$24 sps:$4 sm:$0xff]  }
  0xe8   :  { %440 = vmatpush1.bf16.msra.mxu0 %v3780_v57  ;;  %v3919_v57 = vld [vmem:[#allocation5 + $0x2dc] ss:$24 sps:$4 sm:$0xff]  }
  0xe9   :  { %441 = vmatprep.subr.bf16.mxu0 %v3785_v59  ;;  %v3926_v59 = vld [vmem:[#allocation5 + $0x30c] ss:$24 sps:$4 sm:$0xff]  }
  0xec   :  { %442 = vmatpush1.bf16.msra.mxu0 %v3783_v60 }
  0xed   :  { %443 = vmatprep.subr.bf16.mxu0 %v3788_v61 }
  0xf0   :  { %444 = vmatpush1.bf16.msra.mxu0 %v3786_v62 }
  0xf1   :  { %445 = vmatprep.subr.bf16.mxu0 %v3791_v63 }
  0xf4   :  { %446 = vmatpush1.bf16.msra.mxu0 %v3789_v1 }
  0xf5   :  { %447 = vmatprep.subr.bf16.mxu0 %v3794_v2 }
  0xf8   :  { %448 = vmatpush1.bf16.msra.mxu0 %v3792_v3  ;;  %v3921_v3 = vld [vmem:[#allocation5 + $0x300] ss:$24 sps:$4 sm:$0xff]  }
  0xf9   :  { %449 = vmatprep.subr.bf16.mxu0 %v3797_v4  ;;  %v3924_v4 = vld [vmem:[#allocation5 + $0x308] ss:$24 sps:$4 sm:$0xff]  }
  0xfc   :  { %450 = vmatpush1.bf16.msra.mxu0 %v3795_v5  ;;  %v3929_v5 = vld [vmem:[#allocation5 + $0x334] ss:$24 sps:$4 sm:$0xff]  }
  0xfd   :  { %451 = vmatprep.subr.bf16.mxu0 %v3800_v6  ;;  %v3932_v6 = vld [vmem:[#allocation5 + $0x33c] ss:$24 sps:$4 sm:$0xff]  }
 0x100   :  { %452 = vmatpush1.bf16.msra.mxu0 %v3798_v7  ;;  %v3927_v7 = vld [vmem:[#allocation5 + $0x330] ss:$24 sps:$4 sm:$0xff]  }
 0x101   :  { %480 = vmatprep.subr.bf16.mxu0 %v3803_v8  ;;  %v3930_v8 = vld [vmem:[#allocation5 + $0x338] ss:$24 sps:$4 sm:$0xff]  }
 0x103   :  { %3294 = vmatmul.mubr.msk.bf16.vlgmr.msra.gmra.mrb[4].mxu0 %vm4608_vm2, %v4487_v58 }
 0x104   :  { %481 = vmatpush1.bf16.msra.mxu0 %v3801_v9  ;;  %512 = vmatprep.mubr.bf16.mxu0 %v4486_v0  ;;  %v3824_v0 = vld [vmem:[#allocation2 + $0x164] ss:$24 sps:$4 sm:$0xff]  }
 0x105   :  { %482 = vmatprep.subr.bf16.mxu0 %v3806_v10  ;;  %v3935_v9 = vld [vmem:[#allocation5 + $0x364] ss:$24 sps:$4 sm:$0xff]  }
 0x106   :  { %v3938_v10 = vld [vmem:[#allocation5 + $0x36c] ss:$24 sps:$4 sm:$0xff]  }
 0x108   :  { %483 = vmatpush1.bf16.msra.mxu0 %v3804_v11  ;;  %v3933_v11 = vld [vmem:[#allocation5 + $0x360] ss:$24 sps:$4 sm:$0xff]  }
 0x109   :  { %484 = vmatprep.subr.bf16.mxu0 %v3809_v12  ;;  %v3936_v12 = vld [vmem:[#allocation5 + $0x368] ss:$24 sps:$4 sm:$0xff]  }
 0x10c   :  { %485 = vmatpush1.bf16.msra.mxu0 %v3807_v13  ;;  %v3941_v13 = vld [vmem:[#allocation5 + $0x394] ss:$24 sps:$4 sm:$0xff]  }
 0x10d   :  { %486 = vmatprep.subr.bf16.mxu0 %v3812_v14  ;;  %v3944_v14 = vld [vmem:[#allocation5 + $0x39c] ss:$24 sps:$4 sm:$0xff]  }
 0x110   :  { %487 = vmatpush1.bf16.msra.mxu0 %v3810_v15  ;;  %v3939_v15 = vld [vmem:[#allocation5 + $0x390] ss:$24 sps:$4 sm:$0xff]  }
 0x111   :  { %488 = vmatprep.subr.bf16.mxu0 %v3815_v16  ;;  %v3942_v16 = vld [vmem:[#allocation5 + $0x398] ss:$24 sps:$4 sm:$0xff]  }
 0x114   :  { %489 = vmatpush1.bf16.msra.mxu0 %v3813_v17  ;;  %v3947_v17 = vld [vmem:[#allocation5 + $0x3c4] ss:$24 sps:$4 sm:$0xff]  }
 0x115   :  { %490 = vmatprep.subr.bf16.mxu0 %v3818_v18  ;;  %v3950_v18 = vld [vmem:[#allocation5 + $0x3cc] ss:$24 sps:$4 sm:$0xff]  }
 0x118   :  { %491 = vmatpush1.bf16.msra.mxu0 %v3816_v19  ;;  %v3945_v19 = vld [vmem:[#allocation5 + $0x3c0] ss:$24 sps:$4 sm:$0xff]  }
 0x119   :  { %492 = vmatprep.subr.bf16.mxu0 %v3821_v20  ;;  %v3948_v20 = vld [vmem:[#allocation5 + $0x3c8] ss:$24 sps:$4 sm:$0xff]  }
 0x11c   :  { %493 = vmatpush1.bf16.msra.mxu0 %v3819_v21  ;;  %v3953_v21 = vld [vmem:[#allocation5 + $0x3f4] ss:$24 sps:$4 sm:$0xff]  }
 0x11d   :  { %494 = vmatprep.subr.bf16.mxu0 %v3824_v0  ;;  %v3956_v0 = vld [vmem:[#allocation5 + $0x3fc] ss:$24 sps:$4 sm:$0xff]  }
 0x120   :  { %495 = vmatpush1.bf16.msra.mxu0 %v3822_v22  ;;  %v3951_v22 = vld [vmem:[#allocation5 + $0x3f0] ss:$24 sps:$4 sm:$0xff]  }
 0x121   :  { %2418 = vmatprep.subr.bf16.mxu0 %v3829_v23  ;;  %v3954_v23 = vld [vmem:[#allocation5 + $0x3f8] ss:$24 sps:$4 sm:$0xff]  }
 0x123   :  { %3296 = vmatmul.mubr.msk.bf16.vlgmr.msra.gmra.mrb[8].mxu0 %vm4608_vm2, %v4487_v58  ;;  %v3917_v58 = vld [vmem:[#allocation5 + $0x2d8] ss:$24 sps:$4 sm:$0xff]  }
 0x124   :  { %2419 = vmatpush1.bf16.msra.mxu0 %v3827_v24  ;;  %v3959_v24 = vld [vmem:[#allocation5 + $0x424] ss:$24 sps:$4 sm:$0xff]  }
 0x125   :  { %2420 = vmatprep.subr.bf16.mxu0 %v3835_v25  ;;  %v3962_v25 = vld [vmem:[#allocation5 + $0x42c] ss:$24 sps:$4 sm:$0xff]  }
 0x128   :  { %2421 = vmatpush1.bf16.msra.mxu0 %v3833_v26  ;;  %v3957_v26 = vld [vmem:[#allocation5 + $0x420] ss:$24 sps:$4 sm:$0xff]  }
 0x129   :  { %2422 = vmatprep.subr.bf16.mxu0 %v3841_v27  ;;  %v3960_v27 = vld [vmem:[#allocation5 + $0x428] ss:$24 sps:$4 sm:$0xff]  }
 0x12c   :  { %2423 = vmatpush1.bf16.msra.mxu0 %v3839_v28  ;;  %v3965_v28 = vld [vmem:[#allocation5 + $0x454] ss:$24 sps:$4 sm:$0xff]  }
 0x12d   :  { %2424 = vmatprep.subr.bf16.mxu0 %v3847_v29  ;;  %v3968_v29 = vld [vmem:[#allocation5 + $0x45c] ss:$24 sps:$4 sm:$0xff]  }
 0x130   :  { %2425 = vmatpush1.bf16.msra.mxu0 %v3845_v30 }
 0x131   :  { %2426 = vmatprep.subr.bf16.mxu0 %v3853_v31  ;;  %v3963_v31 = vld [vmem:[#allocation5 + $0x450] ss:$24 sps:$4 sm:$0xff]  }
 0x134   :  { %2427 = vmatpush1.bf16.msra.mxu0 %v3851_v32  ;;  %v3966_v32 = vld [vmem:[#allocation5 + $0x458] ss:$24 sps:$4 sm:$0xff]  }
 0x135   :  { %2428 = vmatprep.subr.bf16.mxu0 %v3859_v33 }
 0x138   :  { %2429 = vmatpush1.bf16.msra.mxu0 %v3857_v34  ;;  %v3971_v34 = vld [vmem:[#allocation5 + $0x484] ss:$24 sps:$4 sm:$0xff]  }
 0x139   :  { %2430 = vmatprep.subr.bf16.mxu0 %v3865_v35  ;;  %v3974_v35 = vld [vmem:[#allocation5 + $0x48c] ss:$24 sps:$4 sm:$0xff]  }
 0x13c   :  { %2431 = vmatpush1.bf16.msra.mxu0 %v3863_v37 }
 0x13d   :  { %2432 = vmatprep.subr.bf16.mxu0 %v3871_v39 }
 0x140   :  { %2433 = vmatpush1.bf16.msra.mxu0 %v3869_v41  ;;  %v3972_v41 = vld [vmem:[#allocation5 + $0x488] ss:$24 sps:$4 sm:$0xff]  }
 0x141   :  { %2434 = vmatprep.subr.bf16.mxu0 %v3877_v42  ;;  %v3977_v42 = vld [vmem:[#allocation5 + $0x4b4] ss:$24 sps:$4 sm:$0xff]  }
 0x144   :  { %2435 = vmatpush1.bf16.msra.mxu0 %v3875_v43  ;;  %v3980_v43 = vld [vmem:[#allocation5 + $0x4bc] ss:$24 sps:$4 sm:$0xff]  }
 0x145   :  { %2436 = vmatprep.subr.bf16.mxu0 %v3883_v44  ;;  %v3975_v44 = vld [vmem:[#allocation5 + $0x4b0] ss:$24 sps:$4 sm:$0xff]  }
 0x148   :  { %2437 = vmatpush1.bf16.msra.mxu0 %v3881_v45  ;;  %v3978_v45 = vld [vmem:[#allocation5 + $0x4b8] ss:$24 sps:$4 sm:$0xff]  }
 0x149   :  { %2438 = vmatprep.subr.bf16.mxu0 %v3889_v46  ;;  %v3983_v46 = vld [vmem:[#allocation5 + $0x4e4] ss:$24 sps:$4 sm:$0xff]  }
 0x14c   :  { %2439 = vmatpush1.bf16.msra.mxu0 %v3887_v47  ;;  %v3986_v47 = vld [vmem:[#allocation5 + $0x4ec] ss:$24 sps:$4 sm:$0xff]  }
 0x14d   :  { %2440 = vmatprep.subr.bf16.mxu0 %v3895_v48  ;;  %v3981_v48 = vld [vmem:[#allocation5 + $0x4e0] ss:$24 sps:$4 sm:$0xff]  }
 0x150   :  { %2441 = vmatpush1.bf16.msra.mxu0 %v3893_v50  ;;  %v3984_v50 = vld [vmem:[#allocation5 + $0x4e8] ss:$24 sps:$4 sm:$0xff]  }
 0x151   :  { %2442 = vmatprep.subr.bf16.mxu0 %v3901_v51  ;;  %v3989_v51 = vld [vmem:[#allocation5 + $0x514] ss:$24 sps:$4 sm:$0xff]  }
 0x154   :  { %2443 = vmatpush1.bf16.msra.mxu0 %v3899_v52  ;;  %v3992_v52 = vld [vmem:[#allocation5 + $0x51c] ss:$24 sps:$4 sm:$0xff]  }
 0x155   :  { %2444 = vmatprep.subr.bf16.mxu0 %v3907_v53  ;;  %v3987_v53 = vld [vmem:[#allocation5 + $0x510] ss:$24 sps:$4 sm:$0xff]  }
 0x158   :  { %2445 = vmatpush1.bf16.msra.mxu0 %v3905_v54  ;;  %v3990_v54 = vld [vmem:[#allocation5 + $0x518] ss:$24 sps:$4 sm:$0xff]  }
 0x159   :  { %2446 = vmatprep.subr.bf16.mxu0 %v3913_v55  ;;  %v3995_v55 = vld [vmem:[#allocation5 + $0x544] ss:$24 sps:$4 sm:$0xff]  }
 0x15c   :  { %2447 = vmatpush1.bf16.msra.mxu0 %v3911_v56  ;;  %v3998_v56 = vld [vmem:[#allocation5 + $0x54c] ss:$24 sps:$4 sm:$0xff]  }
 0x15d   :  { %2448 = vmatprep.subr.bf16.mxu0 %v3919_v57  ;;  %v3993_v57 = vld [vmem:[#allocation5 + $0x540] ss:$24 sps:$4 sm:$0xff]  }
 0x160   :  { %2449 = vmatpush1.bf16.msra.mxu0 %v3917_v58  ;;  %v3996_v58 = vld [vmem:[#allocation5 + $0x548] ss:$24 sps:$4 sm:$0xff]  }
 0x161   :  { %2461 = vmatprep.subr.bf16.mxu0 %v3926_v59  ;;  %v4001_v59 = vld [vmem:[#allocation5 + $0x574] ss:$24 sps:$4 sm:$0xff]  }
 0x1b6   :  { %v428_v60 = vpop.f32.mrb[0].mxu0 }
 0x1b7   :  { %v430_v61 = vpop.f32.mrb[1].mxu0 }
 0x1b8   :  { %v432_v62 = vpop.f32.mrb[2].mxu0 }
 0x1b9   :  { %v4623_v63 = vpack.c.bf16 %v432_v62, %v428_v60  ;;  %v434_v1 = vpop.f32.mrb[3].mxu0  ;;  %v4004_v60 = vld [vmem:[#allocation5 + $0x57c] ss:$24 sps:$4 sm:$0xff]   ;;  %v4002_v62 = vld [vmem:[#allocation5 + $0x578] ss:$24 sps:$4 sm:$0xff]  }
 0x1ba   :  { %v4625_v2 = vpack.c.bf16 %v434_v1, %v430_v61  ;;  %v3999_v61 = vld [vmem:[#allocation5 + $0x570] ss:$24 sps:$4 sm:$0xff]   ;;  %v4007_v1 = vld [vmem:[#allocation5 + $0x5a4] ss:$24 sps:$4 sm:$0xff]  }
 0x1bc   :  { %2321 = vmatprep.mubr.bf16.mxu1 %v4625_v2  ;;  %2450 = vmatprep.mubr.bf16.mxu0 %v4625_v2 }
 0x1bd   :  { %2322 = vmatmul.mubr.bf16.vlgmr.msra.gmra.mrb[0].mxu1 %v4623_v63  ;;  %2451 = vmatmul.mubr.bf16.vlgmr.msra.gmra.mrb[12].mxu0 %v4623_v63 }
 0x1be   :  { %2333 = vmatpush1.bf16.msra.mxu1 %v3921_v3  ;;  %2462 = vmatpush1.bf16.msra.mxu0 %v3924_v4  ;;  %v4010_v3 = vld [vmem:[#allocation5 + $0x5ac] ss:$24 sps:$4 sm:$0xff]   ;;  %v4005_v4 = vld [vmem:[#allocation5 + $0x5a0] ss:$24 sps:$4 sm:$0xff]  }
 0x1bf   :  { %2334 = vmatprep.subr.bf16.mxu1 %v3929_v5  ;;  %2463 = vmatprep.subr.bf16.mxu0 %v3932_v6  ;;  %v4008_v5 = vld [vmem:[#allocation5 + $0x5a8] ss:$24 sps:$4 sm:$0xff]   ;;  %v4013_v6 = vld [vmem:[#allocation5 + $0x5d4] ss:$24 sps:$4 sm:$0xff]  }
 0x1c2   :  { %2335 = vmatpush1.bf16.msra.mxu1 %v3927_v7  ;;  %2464 = vmatpush1.bf16.msra.mxu0 %v3930_v8  ;;  %v4016_v7 = vld [vmem:[#allocation5 + $0x5dc] ss:$24 sps:$4 sm:$0xff]  }
 0x1c3   :  { %2336 = vmatprep.subr.bf16.mxu1 %v3935_v9  ;;  %2465 = vmatprep.subr.bf16.mxu0 %v3938_v10  ;;  %v4011_v9 = vld [vmem:[#allocation5 + $0x5d0] ss:$24 sps:$4 sm:$0xff]  }
 0x1c4   :  { %v4014_v10 = vld [vmem:[#allocation5 + $0x5d8] ss:$24 sps:$4 sm:$0xff]  }
 0x1c6   :  { %2337 = vmatpush1.bf16.msra.mxu1 %v3933_v11  ;;  %2466 = vmatpush1.bf16.msra.mxu0 %v3936_v12  ;;  %v4019_v12 = vld [vmem:[#allocation5 + $0x604] ss:$24 sps:$4 sm:$0xff]  }
 0x1c7   :  { %2338 = vmatprep.subr.bf16.mxu1 %v3941_v13  ;;  %2467 = vmatprep.subr.bf16.mxu0 %v3944_v14  ;;  %v4022_v13 = vld [vmem:[#allocation5 + $0x60c] ss:$24 sps:$4 sm:$0xff]  }
 0x1ca   :  { %2339 = vmatpush1.bf16.msra.mxu1 %v3939_v15  ;;  %2468 = vmatpush1.bf16.msra.mxu0 %v3942_v16 }
 0x1cb   :  { %2340 = vmatprep.subr.bf16.mxu1 %v3947_v17  ;;  %2469 = vmatprep.subr.bf16.mxu0 %v3950_v18  ;;  %v4017_v18 = vld [vmem:[#allocation5 + $0x600] ss:$24 sps:$4 sm:$0xff]  }
 0x1ce   :  { %2341 = vmatpush1.bf16.msra.mxu1 %v3945_v19  ;;  %2470 = vmatpush1.bf16.msra.mxu0 %v3948_v20  ;;  %v4020_v19 = vld [vmem:[#allocation5 + $0x608] ss:$24 sps:$4 sm:$0xff]   ;;  %v4025_v20 = vld [vmem:[#allocation5 + $0x634] ss:$24 sps:$4 sm:$0xff]  }
 0x1cf   :  { %2342 = vmatprep.subr.bf16.mxu1 %v3953_v21  ;;  %2471 = vmatprep.subr.bf16.mxu0 %v3956_v0  ;;  %v4028_v21 = vld [vmem:[#allocation5 + $0x63c] ss:$24 sps:$4 sm:$0xff]   ;;  %v4023_v0 = vld [vmem:[#allocation5 + $0x630] ss:$24 sps:$4 sm:$0xff]  }
 0x1d2   :  { %2343 = vmatpush1.bf16.msra.mxu1 %v3951_v22  ;;  %2472 = vmatpush1.bf16.msra.mxu0 %v3954_v23  ;;  %v4026_v22 = vld [vmem:[#allocation5 + $0x638] ss:$24 sps:$4 sm:$0xff]   ;;  %v4031_v23 = vld [vmem:[#allocation5 + $0x664] ss:$24 sps:$4 sm:$0xff]  }
 0x1d3   :  { %2344 = vmatprep.subr.bf16.mxu1 %v3959_v24  ;;  %2473 = vmatprep.subr.bf16.mxu0 %v3962_v25  ;;  %v4034_v24 = vld [vmem:[#allocation5 + $0x66c] ss:$24 sps:$4 sm:$0xff]   ;;  %v4029_v25 = vld [vmem:[#allocation5 + $0x660] ss:$24 sps:$4 sm:$0xff]  }
 0x1d6   :  { %v471_v30 = vpop.f32.mrb[4].mxu0  ;;  %2345 = vmatpush1.bf16.msra.mxu1 %v3957_v26  ;;  %2474 = vmatpush1.bf16.msra.mxu0 %v3960_v27  ;;  %v4032_v26 = vld [vmem:[#allocation5 + $0x668] ss:$24 sps:$4 sm:$0xff]   ;;  %v4037_v27 = vld [vmem:[#allocation5 + $0x694] ss:$24 sps:$4 sm:$0xff]  }
 0x1d7   :  { %v473_v33 = vpop.f32.mrb[5].mxu0  ;;  %2346 = vmatprep.subr.bf16.mxu1 %v3965_v28  ;;  %2475 = vmatprep.subr.bf16.mxu0 %v3968_v29  ;;  %v4040_v28 = vld [vmem:[#allocation5 + $0x69c] ss:$24 sps:$4 sm:$0xff]   ;;  %v4035_v29 = vld [vmem:[#allocation5 + $0x690] ss:$24 sps:$4 sm:$0xff]  }
 0x1d8   :  { %v475_v36 = vpop.f32.mrb[6].mxu0 }
 0x1d9   :  { %v4631_v37 = vpack.c.bf16 %v475_v36, %v471_v30  ;;  %v477_v38 = vpop.f32.mrb[7].mxu0  ;;  %v4038_v30 = vld [vmem:[#allocation5 + $0x698] ss:$24 sps:$4 sm:$0xff]   ;;  %v4052_v36 = vld [vmem:[#allocation5 + $0x6fc] ss:$24 sps:$4 sm:$0xff]  }
 0x1da   :  { %v4633_v39 = vpack.c.bf16 %v477_v38, %v473_v33  ;;  %2347 = vmatpush1.bf16.msra.mxu1 %v3963_v31  ;;  %2476 = vmatpush1.bf16.msra.mxu0 %v3966_v32  ;;  %v4043_v31 = vld [vmem:[#allocation5 + $0x6c4] ss:$24 sps:$4 sm:$0xff]   ;;  %v4041_v33 = vld [vmem:[#allocation5 + $0x6c0] ss:$24 sps:$4 sm:$0xff]   ;;  %v4047_v38 = vld [vmem:[#allocation5 + $0x6f0] ss:$24 sps:$4 sm:$0xff]  }
 0x1db   :  { %2348 = vmatprep.subr.bf16.mxu1 %v3971_v34  ;;  %2477 = vmatprep.subr.bf16.mxu0 %v3974_v35  ;;  %v4046_v32 = vld [vmem:[#allocation5 + $0x6cc] ss:$24 sps:$4 sm:$0xff]   ;;  %v4044_v34 = vld [vmem:[#allocation5 + $0x6c8] ss:$24 sps:$4 sm:$0xff]  }
 0x1dc   :  { %2364 = vmatprep.mubr.bf16.mxu1 %v4633_v39  ;;  %2493 = vmatprep.mubr.bf16.mxu0 %v4633_v39  ;;  %v4049_v35 = vld [vmem:[#allocation5 + $0x6f4] ss:$24 sps:$4 sm:$0xff]  }
 0x1de   :  { %2349 = vmatpush1.bf16.msra.mxu1 %v3969_v40  ;;  %2478 = vmatpush1.bf16.msra.mxu0 %v3972_v41  ;;  %v4050_v40 = vld [vmem:[#allocation5 + $0x6f8] ss:$24 sps:$4 sm:$0xff]   ;;  %v4055_v41 = vld [vmem:[#allocation5 + $0x724] ss:$24 sps:$4 sm:$0xff]  }
 0x1df   :  { %2350 = vmatprep.subr.bf16.mxu1 %v3977_v42  ;;  %2479 = vmatprep.subr.bf16.mxu0 %v3980_v43  ;;  %v4058_v42 = vld [vmem:[#allocation5 + $0x72c] ss:$24 sps:$4 sm:$0xff]   ;;  %v4053_v43 = vld [vmem:[#allocation5 + $0x720] ss:$24 sps:$4 sm:$0xff]  }
 0x1e2   :  { %2351 = vmatpush1.bf16.msra.mxu1 %v3975_v44  ;;  %2480 = vmatpush1.bf16.msra.mxu0 %v3978_v45  ;;  %v4056_v44 = vld [vmem:[#allocation5 + $0x728] ss:$24 sps:$4 sm:$0xff]   ;;  %v4061_v45 = vld [vmem:[#allocation5 + $0x754] ss:$24 sps:$4 sm:$0xff]  }
 0x1e3   :  { %2352 = vmatprep.subr.bf16.mxu1 %v3983_v46  ;;  %2481 = vmatprep.subr.bf16.mxu0 %v3986_v47  ;;  %v4064_v46 = vld [vmem:[#allocation5 + $0x75c] ss:$24 sps:$4 sm:$0xff]   ;;  %v4059_v47 = vld [vmem:[#allocation5 + $0x750] ss:$24 sps:$4 sm:$0xff]  }
 0x1e6   :  { %2353 = vmatpush1.bf16.msra.mxu1 %v3981_v48  ;;  %2482 = vmatpush1.bf16.msra.mxu0 %v3984_v50  ;;  %v4062_v48 = vld [vmem:[#allocation5 + $0x758] ss:$24 sps:$4 sm:$0xff]   ;;  %v4067_v50 = vld [vmem:[#allocation5 + $0x784] ss:$24 sps:$4 sm:$0xff]  }
 0x1e7   :  { %2354 = vmatprep.subr.bf16.mxu1 %v3989_v51  ;;  %2483 = vmatprep.subr.bf16.mxu0 %v3992_v52  ;;  %v4070_v51 = vld [vmem:[#allocation5 + $0x78c] ss:$24 sps:$4 sm:$0xff]   ;;  %v4065_v52 = vld [vmem:[#allocation5 + $0x780] ss:$24 sps:$4 sm:$0xff]  }
 0x1ea   :  { %2355 = vmatpush1.bf16.msra.mxu1 %v3987_v53  ;;  %2484 = vmatpush1.bf16.msra.mxu0 %v3990_v54  ;;  %v4068_v53 = vld [vmem:[#allocation5 + $0x788] ss:$24 sps:$4 sm:$0xff]   ;;  %v4073_v54 = vld [vmem:[#allocation5 + $0x7b4] ss:$24 sps:$4 sm:$0xff]  }
 0x1eb   :  { %2356 = vmatprep.subr.bf16.mxu1 %v3995_v55  ;;  %2485 = vmatprep.subr.bf16.mxu0 %v3998_v56  ;;  %v4076_v55 = vld [vmem:[#allocation5 + $0x7bc] ss:$24 sps:$4 sm:$0xff]   ;;  %v4071_v56 = vld [vmem:[#allocation5 + $0x7b0] ss:$24 sps:$4 sm:$0xff]  }
 0x1ee   :  { %2357 = vmatpush1.bf16.msra.mxu1 %v3993_v57  ;;  %2486 = vmatpush1.bf16.msra.mxu0 %v3996_v58  ;;  %v4074_v57 = vld [vmem:[#allocation5 + $0x7b8] ss:$24 sps:$4 sm:$0xff]   ;;  %v4079_v58 = vld [vmem:[#allocation5 + $0x7e4] ss:$24 sps:$4 sm:$0xff]  }
 0x1ef   :  { %2358 = vmatprep.subr.bf16.mxu1 %v4001_v59  ;;  %2487 = vmatprep.subr.bf16.mxu0 %v4004_v60  ;;  %v4082_v59 = vld [vmem:[#allocation5 + $0x7ec] ss:$24 sps:$4 sm:$0xff]   ;;  %v4077_v60 = vld [vmem:[#allocation5 + $0x7e0] ss:$24 sps:$4 sm:$0xff]  }
 0x1f2   :  { %2359 = vmatpush1.bf16.msra.mxu1 %v3999_v61  ;;  %2488 = vmatpush1.bf16.msra.mxu0 %v4002_v62  ;;  %v4080_v61 = vld [vmem:[#allocation5 + $0x7e8] ss:$24 sps:$4 sm:$0xff]   ;;  %v4085_v62 = vld [vmem:[#allocation5 + $0x814] ss:$24 sps:$4 sm:$0xff]  }
 0x1f3   :  { %2360 = vmatprep.subr.bf16.mxu1 %v4007_v1  ;;  %2489 = vmatprep.subr.bf16.mxu0 %v4010_v3  ;;  %v4088_v1 = vld [vmem:[#allocation5 + $0x81c] ss:$24 sps:$4 sm:$0xff]   ;;  %v4083_v3 = vld [vmem:[#allocation5 + $0x810] ss:$24 sps:$4 sm:$0xff]  }
 0x1f6   :  { %v514_v8 = vpop.f32.mrb[8].mxu0  ;;  %2361 = vmatpush1.bf16.msra.mxu1 %v4005_v4  ;;  %2490 = vmatpush1.bf16.msra.mxu0 %v4008_v5  ;;  %v4086_v4 = vld [vmem:[#allocation5 + $0x818] ss:$24 sps:$4 sm:$0xff]   ;;  %v4091_v5 = vld [vmem:[#allocation5 + $0x844] ss:$24 sps:$4 sm:$0xff]  }
 0x1f7   :  { %v516_v11 = vpop.f32.mrb[9].mxu0  ;;  %2362 = vmatprep.subr.bf16.mxu1 %v4013_v6  ;;  %2491 = vmatprep.subr.bf16.mxu0 %v4016_v7  ;;  %v4094_v6 = vld [vmem:[#allocation5 + $0x84c] ss:$24 sps:$4 sm:$0xff]   ;;  %v4089_v7 = vld [vmem:[#allocation5 + $0x840] ss:$24 sps:$4 sm:$0xff]  }
 0x1f8   :  { %v518_v14 = vpop.f32.mrb[10].mxu0 }
 0x1f9   :  { %v4637_v15 = vpack.c.bf16 %v518_v14, %v514_v8  ;;  %v520_v16 = vpop.f32.mrb[11].mxu0  ;;  %v4092_v8 = vld [vmem:[#allocation5 + $0x848] ss:$24 sps:$4 sm:$0xff]   ;;  %v4106_v14 = vld [vmem:[#allocation5 + $0x8ac] ss:$24 sps:$4 sm:$0xff]  }
 0x1fa   :  { %v4639_v17 = vpack.c.bf16 %v520_v16, %v516_v11  ;;  %2363 = vmatpush1.bf16.msra.mxu1 %v4011_v9  ;;  %2492 = vmatpush1.bf16.msra.mxu0 %v4014_v10  ;;  %v4097_v9 = vld [vmem:[#allocation5 + $0x874] ss:$24 sps:$4 sm:$0xff]   ;;  %v4095_v11 = vld [vmem:[#allocation5 + $0x870] ss:$24 sps:$4 sm:$0xff]   ;;  %v4101_v16 = vld [vmem:[#allocation5 + $0x8a0] ss:$24 sps:$4 sm:$0xff]  }
 0x1fb   :  { %2375 = vmatprep.subr.bf16.mxu1 %v4019_v12  ;;  %2504 = vmatprep.subr.bf16.mxu0 %v4022_v13  ;;  %v4100_v10 = vld [vmem:[#allocation5 + $0x87c] ss:$24 sps:$4 sm:$0xff]   ;;  %v4098_v12 = vld [vmem:[#allocation5 + $0x878] ss:$24 sps:$4 sm:$0xff]  }
 0x1fc   :  { %v4103_v13 = vld [vmem:[#allocation5 + $0x8a4] ss:$24 sps:$4 sm:$0xff]  }
 0x1fd   :  { %2365 = vmatmul.mubr.bf16.vlgmr.msra.gmra.mrb[0].mxu1 %v4631_v37  ;;  %2494 = vmatmul.mubr.bf16.vlgmr.msra.gmra.mrb[12].mxu0 %v4631_v37 }
 0x1fe   :  { %2376 = vmatpush1.bf16.msra.mxu1 %v4017_v18  ;;  %2407 = vmatprep.mubr.bf16.mxu1 %v4639_v17  ;;  %v4104_v18 = vld [vmem:[#allocation5 + $0x8a8] ss:$24 sps:$4 sm:$0xff]  }
 0x1ff   :  { %2505 = vmatpush1.bf16.msra.mxu0 %v4020_v19  ;;  %2536 = vmatprep.mubr.bf16.mxu0 %v4639_v17  ;;  %v4109_v19 = vld [vmem:[#allocation5 + $0x8d4] ss:$24 sps:$4 sm:$0xff]  }
 0x200   :  { %2377 = vmatprep.subr.bf16.mxu1 %v4025_v20  ;;  %2506 = vmatprep.subr.bf16.mxu0 %v4028_v21  ;;  %v4112_v20 = vld [vmem:[#allocation5 + $0x8dc] ss:$24 sps:$4 sm:$0xff]   ;;  %v4107_v21 = vld [vmem:[#allocation5 + $0x8d0] ss:$24 sps:$4 sm:$0xff]  }
 0x202   :  { %2378 = vmatpush1.bf16.msra.mxu1 %v4023_v0  ;;  %v4110_v0 = vld [vmem:[#allocation5 + $0x8d8] ss:$24 sps:$4 sm:$0xff]  }
 0x203   :  { %2507 = vmatpush1.bf16.msra.mxu0 %v4026_v22  ;;  %2379 = vmatprep.subr.bf16.mxu1 %v4031_v23  ;;  %v4115_v22 = vld [vmem:[#allocation5 + $0x14] ss:$24 sps:$4 sm:$0xff]   ;;  %v4113_v23 = vld [vmem:[#allocation5 + $0x10] ss:$24 sps:$4 sm:$0xff]  }
 0x204   :  { %2508 = vmatprep.subr.bf16.mxu0 %v4034_v24  ;;  %v4118_v24 = vld [vmem:[#allocation5 + $0x44] ss:$24 sps:$4 sm:$0xff]  }
 0x206   :  { %2380 = vmatpush1.bf16.msra.mxu1 %v4029_v25  ;;  %v4116_v25 = vld [vmem:[#allocation5 + $0x40] ss:$24 sps:$4 sm:$0xff]  }
 0x207   :  { %2509 = vmatpush1.bf16.msra.mxu0 %v4032_v26  ;;  %2381 = vmatprep.subr.bf16.mxu1 %v4037_v27  ;;  %v4121_v26 = vld [vmem:[#allocation5 + $0x74] ss:$24 sps:$4 sm:$0xff]   ;;  %v4119_v27 = vld [vmem:[#allocation5 + $0x70] ss:$24 sps:$4 sm:$0xff]  }
 0x208   :  { %2510 = vmatprep.subr.bf16.mxu0 %v4040_v28  ;;  %v4124_v28 = vld [vmem:[#allocation5 + $0xa4] ss:$24 sps:$4 sm:$0xff]  }
 0x20a   :  { %2382 = vmatpush1.bf16.msra.mxu1 %v4035_v29  ;;  %v4122_v29 = vld [vmem:[#allocation5 + $0xa0] ss:$24 sps:$4 sm:$0xff]  }
 0x20b   :  { %2511 = vmatpush1.bf16.msra.mxu0 %v4038_v30  ;;  %2383 = vmatprep.subr.bf16.mxu1 %v4043_v31  ;;  %v4127_v30 = vld [vmem:[#allocation5 + $0xd4] ss:$24 sps:$4 sm:$0xff]   ;;  %v4125_v31 = vld [vmem:[#allocation5 + $0xd0] ss:$24 sps:$4 sm:$0xff]  }
 0x20c   :  { %2512 = vmatprep.subr.bf16.mxu0 %v4046_v32  ;;  %v4130_v32 = vld [vmem:[#allocation5 + $0x104] ss:$24 sps:$4 sm:$0xff]  }
 0x20e   :  { %2384 = vmatpush1.bf16.msra.mxu1 %v4041_v33  ;;  %v4128_v33 = vld [vmem:[#allocation5 + $0x100] ss:$24 sps:$4 sm:$0xff]  }
 0x20f   :  { %2513 = vmatpush1.bf16.msra.mxu0 %v4044_v34  ;;  %2385 = vmatprep.subr.bf16.mxu1 %v4049_v35  ;;  %v4133_v34 = vld [vmem:[#allocation5 + $0x134] ss:$24 sps:$4 sm:$0xff]   ;;  %v4136_v35 = vld [vmem:[#allocation5 + $0x164] ss:$24 sps:$4 sm:$0xff]  }
 0x210   :  { %2514 = vmatprep.subr.bf16.mxu0 %v4052_v36  ;;  %v4134_v36 = vld [vmem:[#allocation5 + $0x160] ss:$24 sps:$4 sm:$0xff]  }
 0x212   :  { %2386 = vmatpush1.bf16.msra.mxu1 %v4047_v38  ;;  %v4139_v38 = vld [vmem:[#allocation5 + $0x194] ss:$24 sps:$4 sm:$0xff]  }
 0x213   :  { %2515 = vmatpush1.bf16.msra.mxu0 %v4050_v40  ;;  %2387 = vmatprep.subr.bf16.mxu1 %v4055_v41  ;;  %v4137_v40 = vld [vmem:[#allocation5 + $0x190] ss:$24 sps:$4 sm:$0xff]   ;;  %v4142_v41 = vld [vmem:[#allocation5 + $0x1c4] ss:$24 sps:$4 sm:$0xff]  }
 0x214   :  { %2516 = vmatprep.subr.bf16.mxu0 %v4058_v42  ;;  %v4140_v42 = vld [vmem:[#allocation5 + $0x1c0] ss:$24 sps:$4 sm:$0xff]  }
 0x216   :  { %2388 = vmatpush1.bf16.msra.mxu1 %v4053_v43  ;;  %v4145_v43 = vld [vmem:[#allocation5 + $0x1f4] ss:$24 sps:$4 sm:$0xff]  }
 0x217   :  { %2517 = vmatpush1.bf16.msra.mxu0 %v4056_v44  ;;  %2389 = vmatprep.subr.bf16.mxu1 %v4061_v45  ;;  %v4143_v44 = vld [vmem:[#allocation5 + $0x1f0] ss:$24 sps:$4 sm:$0xff]   ;;  %v4148_v45 = vld [vmem:[#allocation5 + $0x224] ss:$24 sps:$4 sm:$0xff]  }
 0x218   :  { %2518 = vmatprep.subr.bf16.mxu0 %v4064_v46  ;;  %v4146_v46 = vld [vmem:[#allocation5 + $0x220] ss:$24 sps:$4 sm:$0xff]  }
 0x21a   :  { %2390 = vmatpush1.bf16.msra.mxu1 %v4059_v47  ;;  %v4151_v47 = vld [vmem:[#allocation5 + $0x254] ss:$24 sps:$4 sm:$0xff]  }
 0x21b   :  { %2519 = vmatpush1.bf16.msra.mxu0 %v4062_v48  ;;  %2391 = vmatprep.subr.bf16.mxu1 %v4067_v50  ;;  %v4149_v48 = vld [vmem:[#allocation5 + $0x250] ss:$24 sps:$4 sm:$0xff]   ;;  %v4154_v50 = vld [vmem:[#allocation5 + $0x284] ss:$24 sps:$4 sm:$0xff]  }
 0x21c   :  { %2520 = vmatprep.subr.bf16.mxu0 %v4070_v51  ;;  %v4152_v51 = vld [vmem:[#allocation5 + $0x280] ss:$24 sps:$4 sm:$0xff]  }
 0x21e   :  { %2392 = vmatpush1.bf16.msra.mxu1 %v4065_v52  ;;  %v4157_v52 = vld [vmem:[#allocation5 + $0x2b4] ss:$24 sps:$4 sm:$0xff]  }
 0x21f   :  { %2521 = vmatpush1.bf16.msra.mxu0 %v4068_v53  ;;  %2393 = vmatprep.subr.bf16.mxu1 %v4073_v54  ;;  %v4155_v53 = vld [vmem:[#allocation5 + $0x2b0] ss:$24 sps:$4 sm:$0xff]   ;;  %v4160_v54 = vld [vmem:[#allocation5 + $0x2e4] ss:$24 sps:$4 sm:$0xff]  }
 0x220   :  { %2522 = vmatprep.subr.bf16.mxu0 %v4076_v55  ;;  %v4158_v55 = vld [vmem:[#allocation5 + $0x2e0] ss:$24 sps:$4 sm:$0xff]  }
 0x222   :  { %2394 = vmatpush1.bf16.msra.mxu1 %v4071_v56  ;;  %v4163_v56 = vld [vmem:[#allocation5 + $0x314] ss:$24 sps:$4 sm:$0xff]  }
 0x223   :  { %2523 = vmatpush1.bf16.msra.mxu0 %v4074_v57  ;;  %2395 = vmatprep.subr.bf16.mxu1 %v4079_v58  ;;  %v4161_v57 = vld [vmem:[#allocation5 + $0x310] ss:$24 sps:$4 sm:$0xff]   ;;  %v4166_v58 = vld [vmem:[#allocation5 + $0x344] ss:$24 sps:$4 sm:$0xff]  }
 0x224   :  { %2524 = vmatprep.subr.bf16.mxu0 %v4082_v59  ;;  %v4257_v59 = vld [vmem:[#allocation8 + $0x40] sm:$0xff]  }
 0x226   :  { %2396 = vmatpush1.bf16.msra.mxu1 %v4077_v60  ;;  %v4258_v60 = vld [vmem:[#allocation8] sm:$0xff]  }
 0x227   :  { %2525 = vmatpush1.bf16.msra.mxu0 %v4080_v61  ;;  %2397 = vmatprep.subr.bf16.mxu1 %v4085_v62  ;;  %v4259_v61 = vld [vmem:[#allocation8 + $0x48] sm:$0xff]   ;;  %v4164_v62 = vld [vmem:[#allocation5 + $0x340] ss:$24 sps:$4 sm:$0xff]  }
 0x228   :  { %2526 = vmatprep.subr.bf16.mxu0 %v4088_v1  ;;  %v4169_v1 = vld [vmem:[#allocation5 + $0x374] ss:$24 sps:$4 sm:$0xff]  }
 0x22a   :  { %2398 = vmatpush1.bf16.msra.mxu1 %v4083_v3  ;;  %v4260_v3 = vld [vmem:[#allocation8 + $0x8] sm:$0xff]  }
 0x22b   :  { %2527 = vmatpush1.bf16.msra.mxu0 %v4086_v4  ;;  %2399 = vmatprep.subr.bf16.mxu1 %v4091_v5  ;;  %v4261_v4 = vld [vmem:[#allocation8 + $0x50] sm:$0xff]   ;;  %v4167_v5 = vld [vmem:[#allocation5 + $0x370] ss:$24 sps:$4 sm:$0xff]  }
 0x22c   :  { %2528 = vmatprep.subr.bf16.mxu0 %v4094_v6  ;;  %v4172_v6 = vld [vmem:[#allocation5 + $0x3a4] ss:$24 sps:$4 sm:$0xff]  }
 0x22e   :  { %2400 = vmatpush1.bf16.msra.mxu1 %v4089_v7  ;;  %v4263_v7 = vld [vmem:[#allocation8 + $0x58] sm:$0xff]  }
 0x22f   :  { %2529 = vmatpush1.bf16.msra.mxu0 %v4092_v8  ;;  %2401 = vmatprep.subr.bf16.mxu1 %v4097_v9  ;;  %v4170_v8 = vld [vmem:[#allocation5 + $0x3a0] ss:$24 sps:$4 sm:$0xff]   ;;  %v4173_v9 = vld [vmem:[#allocation5 + $0x3d0] ss:$24 sps:$4 sm:$0xff]  }
 0x230   :  { %2530 = vmatprep.subr.bf16.mxu0 %v4100_v10  ;;  %v4178_v10 = vld [vmem:[#allocation5 + $0x404] ss:$24 sps:$4 sm:$0xff]  }
 0x232   :  { %2402 = vmatpush1.bf16.msra.mxu1 %v4095_v11  ;;  %v4176_v11 = vld [vmem:[#allocation5 + $0x400] ss:$24 sps:$4 sm:$0xff]  }
 0x233   :  { %2531 = vmatpush1.bf16.msra.mxu0 %v4098_v12  ;;  %2403 = vmatprep.subr.bf16.mxu1 %v4103_v13  ;;  %v4181_v12 = vld [vmem:[#allocation5 + $0x434] ss:$24 sps:$4 sm:$0xff]   ;;  %v4264_v13 = vld [vmem:[#allocation8 + $0x18] sm:$0xff]  }
 0x234   :  { %2532 = vmatprep.subr.bf16.mxu0 %v4106_v14  ;;  %v4179_v14 = vld [vmem:[#allocation5 + $0x430] ss:$24 sps:$4 sm:$0xff]  }
 0x236   :  { %2404 = vmatpush1.bf16.msra.mxu1 %v4101_v16  ;;  %v4184_v16 = vld [vmem:[#allocation5 + $0x464] ss:$24 sps:$4 sm:$0xff]  }
 0x237   :  { %2533 = vmatpush1.bf16.msra.mxu0 %v4104_v18  ;;  %2405 = vmatprep.subr.bf16.mxu1 %v4109_v19  ;;  %v4265_v18 = vld [vmem:[#allocation8 + $0x60] sm:$0xff]   ;;  %v4182_v19 = vld [vmem:[#allocation5 + $0x460] ss:$24 sps:$4 sm:$0xff]  }
 0x238   :  { %2534 = vmatprep.subr.bf16.mxu0 %v4112_v20  ;;  %v4266_v20 = vld [vmem:[#allocation8 + $0x20] sm:$0xff]  }
 0x23a   :  { %2406 = vmatpush1.bf16.msra.mxu1 %v4107_v21  ;;  %v4187_v21 = vld [vmem:[#allocation5 + $0x494] ss:$24 sps:$4 sm:$0xff]  }
 0x23b   :  { %2535 = vmatpush1.bf16.msra.mxu0 %v4110_v0  ;;  %2547 = vmatprep.subr.bf16.mxu1 %v4115_v22  ;;  %v4267_v0 = vld [vmem:[#allocation8 + $0x68] sm:$0xff]  }
 0x23c   :  { %3636 = vmatprep.subr.bf16.mxu0 %v4257_v59  ;;  %v4185_v22 = vld [vmem:[#allocation5 + $0x490] ss:$24 sps:$4 sm:$0xff]   ;;  %v4235_v59 = vld [vmem:[#allocation5 + $0x794] ss:$24 sps:$4 sm:$0xff]  }
 0x23d   :  { %2408 = vmatmul.mubr.bf16.vlgmr.msra.gmra.mrb[0].mxu1 %v4637_v15 }
 0x23e   :  { %2537 = vmatmul.mubr.bf16.vlgmr.msra.gmra.mrb[12].mxu0 %v4637_v15  ;;  %2548 = vmatpush1.bf16.msra.mxu1 %v4113_v23  ;;  %v4268_v23 = vld [vmem:[#allocation8 + $0x28] sm:$0xff]  }
 0x23f   :  { %2579 = vmatprep.mubr.bf16.mxu1 %v4625_v2  ;;  %2549 = vmatprep.subr.bf16.mxu1 %v4118_v24  ;;  %v4131_v2 = vld [vmem:[#allocation5 + $0x130] ss:$24 sps:$4 sm:$0xff]   ;;  %v4269_v24 = vld [vmem:[#allocation8 + $0x70] sm:$0xff]  }
 0x240   :  { %3637 = vmatpush3.bf16.msra.mxu0 %v4258_v60  ;;  %v4233_v60 = vld [vmem:[#allocation5 + $0x790] ss:$24 sps:$4 sm:$0xff]  }
 0x241   :  { %3638 = vmatprep.subr.bf16.mxu0 %v4259_v61  ;;  %v4238_v61 = vld [vmem:[#allocation5 + $0x7c4] ss:$24 sps:$4 sm:$0xff]  }
 0x242   :  { %2550 = vmatpush1.bf16.msra.mxu1 %v4116_v25  ;;  %v4190_v25 = vld [vmem:[#allocation5 + $0x4c4] ss:$24 sps:$4 sm:$0xff]  }
 0x243   :  { %2551 = vmatprep.subr.bf16.mxu1 %v4121_v26  ;;  %v4270_v26 = vld [vmem:[#allocation8 + $0x30] sm:$0xff]  }
 0x244   :  { %3639 = vmatpush3.bf16.msra.mxu0 %v4260_v3  ;;  %v4239_v3 = vld [vmem:[#allocation5 + $0x7f0] ss:$24 sps:$4 sm:$0xff]  }
 0x245   :  { %3640 = vmatprep.subr.bf16.mxu0 %v4261_v4  ;;  %v4244_v4 = vld [vmem:[#allocation5 + $0x824] ss:$24 sps:$4 sm:$0xff]  }
 0x246   :  { %2552 = vmatpush1.bf16.msra.mxu1 %v4119_v27  ;;  %v4271_v27 = vld [vmem:[#allocation8 + $0x78] sm:$0xff]  }
 0x247   :  { %2553 = vmatprep.subr.bf16.mxu1 %v4124_v28  ;;  %v4188_v28 = vld [vmem:[#allocation5 + $0x4c0] ss:$24 sps:$4 sm:$0xff]  }
 0x24a   :  { %2554 = vmatpush1.bf16.msra.mxu1 %v4122_v29  ;;  %v4193_v29 = vld [vmem:[#allocation5 + $0x4f4] ss:$24 sps:$4 sm:$0xff]  }
 0x24b   :  { %2555 = vmatprep.subr.bf16.mxu1 %v4127_v30  ;;  %v4272_v30 = vld [vmem:[#allocation8 + $0x38] sm:$0xff]  }
 0x24e   :  { %2556 = vmatpush1.bf16.msra.mxu1 %v4125_v31  ;;  %v4191_v31 = vld [vmem:[#allocation5 + $0x4f0] ss:$24 sps:$4 sm:$0xff]  }
 0x24f   :  { %2557 = vmatprep.subr.bf16.mxu1 %v4130_v32  ;;  %v4196_v32 = vld [vmem:[#allocation5 + $0x524] ss:$24 sps:$4 sm:$0xff]  }
 0x252   :  { %2558 = vmatpush1.bf16.msra.mxu1 %v4128_v33  ;;  %v4273_v33 = vld [vmem:[#allocation8 + $0xc0] sm:$0xff]  }
 0x253   :  { %2559 = vmatprep.subr.bf16.mxu1 %v4133_v34  ;;  %v4194_v34 = vld [vmem:[#allocation5 + $0x520] ss:$24 sps:$4 sm:$0xff]  }
 0x256   :  { %2560 = vmatpush1.bf16.msra.mxu1 %v4131_v2  ;;  %v4199_v2 = vld [vmem:[#allocation5 + $0x554] ss:$24 sps:$4 sm:$0xff]  }
 0x257   :  { %2561 = vmatprep.subr.bf16.mxu1 %v4136_v35  ;;  %v4197_v35 = vld [vmem:[#allocation5 + $0x550] ss:$24 sps:$4 sm:$0xff]  }
 0x25a   :  { %2562 = vmatpush1.bf16.msra.mxu1 %v4134_v36  ;;  %v4202_v36 = vld [vmem:[#allocation5 + $0x584] ss:$24 sps:$4 sm:$0xff]  }
 0x25b   :  { %2563 = vmatprep.subr.bf16.mxu1 %v4139_v38  ;;  %v4200_v38 = vld [vmem:[#allocation5 + $0x580] ss:$24 sps:$4 sm:$0xff]  }
 0x25e   :  { %2564 = vmatpush1.bf16.msra.mxu1 %v4137_v40  ;;  %v4205_v40 = vld [vmem:[#allocation5 + $0x5b4] ss:$24 sps:$4 sm:$0xff]  }
 0x25f   :  { %2565 = vmatprep.subr.bf16.mxu1 %v4142_v41  ;;  %v4203_v41 = vld [vmem:[#allocation5 + $0x5b0] ss:$24 sps:$4 sm:$0xff]  }
 0x262   :  { %2566 = vmatpush1.bf16.msra.mxu1 %v4140_v42  ;;  %v4208_v42 = vld [vmem:[#allocation5 + $0x5e4] ss:$24 sps:$4 sm:$0xff]  }
 0x263   :  { %2567 = vmatprep.subr.bf16.mxu1 %v4145_v43  ;;  %v4206_v43 = vld [vmem:[#allocation5 + $0x5e0] ss:$24 sps:$4 sm:$0xff]  }
 0x266   :  { %2568 = vmatpush1.bf16.msra.mxu1 %v4143_v44  ;;  %v4211_v44 = vld [vmem:[#allocation5 + $0x614] ss:$24 sps:$4 sm:$0xff]  }
 0x267   :  { %2569 = vmatprep.subr.bf16.mxu1 %v4148_v45  ;;  %v4209_v45 = vld [vmem:[#allocation5 + $0x610] ss:$24 sps:$4 sm:$0xff]  }
 0x26a   :  { %2570 = vmatpush1.bf16.msra.mxu1 %v4146_v46  ;;  %v4214_v46 = vld [vmem:[#allocation5 + $0x644] ss:$24 sps:$4 sm:$0xff]  }
 0x26b   :  { %2571 = vmatprep.subr.bf16.mxu1 %v4151_v47  ;;  %v4212_v47 = vld [vmem:[#allocation5 + $0x640] ss:$24 sps:$4 sm:$0xff]  }
 0x26e   :  { %2572 = vmatpush1.bf16.msra.mxu1 %v4149_v48  ;;  %v4217_v48 = vld [vmem:[#allocation5 + $0x674] ss:$24 sps:$4 sm:$0xff]  }
 0x26f   :  { %2573 = vmatprep.subr.bf16.mxu1 %v4154_v50  ;;  %v4215_v50 = vld [vmem:[#allocation5 + $0x670] ss:$24 sps:$4 sm:$0xff]  }
 0x272   :  { %2574 = vmatpush1.bf16.msra.mxu1 %v4152_v51  ;;  %v4220_v51 = vld [vmem:[#allocation5 + $0x6a4] ss:$24 sps:$4 sm:$0xff]  }
 0x273   :  { %2575 = vmatprep.subr.bf16.mxu1 %v4157_v52  ;;  %v4218_v52 = vld [vmem:[#allocation5 + $0x6a0] ss:$24 sps:$4 sm:$0xff]  }
 0x276   :  { %2576 = vmatpush1.bf16.msra.mxu1 %v4155_v53  ;;  %v4223_v53 = vld [vmem:[#allocation5 + $0x6d4] ss:$24 sps:$4 sm:$0xff]  }
 0x277   :  { %2577 = vmatprep.subr.bf16.mxu1 %v4160_v54  ;;  %v4221_v54 = vld [vmem:[#allocation5 + $0x6d0] ss:$24 sps:$4 sm:$0xff]  }
 0x27a   :  { %2578 = vmatpush1.bf16.msra.mxu1 %v4158_v55  ;;  %v4226_v55 = vld [vmem:[#allocation5 + $0x704] ss:$24 sps:$4 sm:$0xff]  }
 0x27b   :  { %2590 = vmatprep.subr.bf16.mxu1 %v4163_v56  ;;  %v4229_v56 = vld [vmem:[#allocation5 + $0x734] ss:$24 sps:$4 sm:$0xff]  }
 0x27d   :  { %2580 = vmatmul.mubr.bf16.vlgmr.msra.gmra.mrb[4].mxu1 %v4623_v63  ;;  %v4262_v63 = vld [vmem:[#allocation8 + $0x10] sm:$0xff]  }
 0x27e   :  { %2591 = vmatpush1.bf16.msra.mxu1 %v4161_v57  ;;  %2622 = vmatprep.mubr.bf16.mxu1 %v4633_v39  ;;  %v4175_v39 = vld [vmem:[#allocation5 + $0x3d4] ss:$24 sps:$4 sm:$0xff]   ;;  %v4232_v57 = vld [vmem:[#allocation5 + $0x764] ss:$24 sps:$4 sm:$0xff]  }
 0x27f   :  { %2592 = vmatprep.subr.bf16.mxu1 %v4166_v58  ;;  %3641 = vmatpush3.bf16.msra.mxu0 %v4262_v63  ;;  %v4230_v58 = vld [vmem:[#allocation5 + $0x760] ss:$24 sps:$4 sm:$0xff]   ;;  %v4245_v63 = vld [vmem:[#allocation5 + $0x850] ss:$24 sps:$4 sm:$0xff]  }
 0x280   :  { %3642 = vmatprep.subr.bf16.mxu0 %v4263_v7  ;;  %v4250_v7 = vld [vmem:[#allocation5 + $0x884] ss:$24 sps:$4 sm:$0xff]  }
 0x282   :  { %2593 = vmatpush1.bf16.msra.mxu1 %v4164_v62  ;;  %v4236_v62 = vld [vmem:[#allocation5 + $0x7c0] ss:$24 sps:$4 sm:$0xff]  }
 0x283   :  { %2594 = vmatprep.subr.bf16.mxu1 %v4169_v1  ;;  %3643 = vmatpush3.bf16.msra.mxu0 %v4264_v13  ;;  %v4241_v1 = vld [vmem:[#allocation5 + $0x7f4] ss:$24 sps:$4 sm:$0xff]  }
 0x284   :  { %3644 = vmatprep.subr.bf16.mxu0 %v4265_v18 }
 0x286   :  { %2595 = vmatpush1.bf16.msra.mxu1 %v4167_v5  ;;  %v4242_v5 = vld [vmem:[#allocation5 + $0x820] ss:$24 sps:$4 sm:$0xff]  }
 0x287   :  { %2596 = vmatprep.subr.bf16.mxu1 %v4172_v6  ;;  %3645 = vmatpush3.bf16.msra.mxu0 %v4266_v20  ;;  %v4247_v6 = vld [vmem:[#allocation5 + $0x854] ss:$24 sps:$4 sm:$0xff]  }
 0x288   :  { %3646 = vmatprep.subr.bf16.mxu0 %v4267_v0 }
 0x28a   :  { %2597 = vmatpush1.bf16.msra.mxu1 %v4170_v8  ;;  %v4248_v8 = vld [vmem:[#allocation5 + $0x880] ss:$24 sps:$4 sm:$0xff]  }
 0x28b   :  { %2598 = vmatprep.subr.bf16.mxu1 %v4175_v39  ;;  %3647 = vmatpush3.bf16.msra.mxu0 %v4268_v23  ;;  %v4253_v39 = vld [vmem:[#allocation5 + $0x8b4] ss:$24 sps:$4 sm:$0xff]  }
 0x28c   :  { %3648 = vmatprep.subr.bf16.mxu0 %v4269_v24 }
 0x28e   :  { %2599 = vmatpush1.bf16.msra.mxu1 %v4173_v9  ;;  %v4251_v9 = vld [vmem:[#allocation5 + $0x8b0] ss:$24 sps:$4 sm:$0xff]  }
 0x28f   :  { %2600 = vmatprep.subr.bf16.mxu1 %v4178_v10  ;;  %3649 = vmatpush3.bf16.msra.mxu0 %v4270_v26  ;;  %v4256_v10 = vld [vmem:[#allocation5 + $0x8e4] ss:$24 sps:$4 sm:$0xff]  }
 0x290   :  { %3650 = vmatprep.subr.bf16.mxu0 %v4271_v27 }
 0x292   :  { %2601 = vmatpush1.bf16.msra.mxu1 %v4176_v11  ;;  %v4254_v11 = vld [vmem:[#allocation5 + $0x8e0] ss:$24 sps:$4 sm:$0xff]  }
 0x293   :  { %2602 = vmatprep.subr.bf16.mxu1 %v4181_v12  ;;  %3651 = vmatpush3.bf16.msra.mxu0 %v4272_v30  ;;  %v4654_v12 = vshrl.u32 %v91_v49, 7 }
 0x294   :  { %3658 = vmatprep.subr.bf16.mxu0 %v4273_v33 }
 0x295   :  { %v821_v13 = vsub.s32 0, %v4654_v12  ;;  %v825_v18 = vsub.s32 1, %v4654_v12 }
 0x296   :  { %2603 = vmatpush1.bf16.msra.mxu1 %v4179_v14  ;;  %v4657_v14 = vld [vmem:[#allocation7] sm:$0x3f] }
 0x297   :  { %2604 = vmatprep.subr.bf16.mxu1 %v4184_v16  ;;  %v829_v16 = vsub.s32 2, %v4654_v12  ;;  %v822_v20 = vrot.slane %v4657_v14, %v821_v13  ;;  %v826_v0 = vrot.slane %v4657_v14, %v825_v18  ;;  %v4300_v13 = vld [vmem:[#allocation8 + $0x128] sm:$0xff]   ;;  %v4302_v18 = vld [vmem:[#allocation8 + $0x130] sm:$0xff]  }
 0x29a   :  { %2605 = vmatpush1.bf16.msra.mxu1 %v4182_v19  ;;  %v833_v19 = vsub.s32 3, %v4654_v12 }
 0x29b   :  { %2606 = vmatprep.subr.bf16.mxu1 %v4187_v21  ;;  %v830_v21 = vrot.slane %v4657_v14, %v829_v16  ;;  %v4301_v16 = vld [vmem:[#allocation8 + $0x170] sm:$0xff]  }
 0x29e   :  { %2607 = vmatpush1.bf16.msra.mxu1 %v4185_v22 }
 0x29f   :  { %2608 = vmatprep.subr.bf16.mxu1 %v4190_v25 }
 0x2a2   :  { %2609 = vmatpush1.bf16.msra.mxu1 %v4188_v28 }
 0x2a3   :  { %2610 = vmatprep.subr.bf16.mxu1 %v4193_v29 }
 0x2a6   :  { %2611 = vmatpush1.bf16.msra.mxu1 %v4191_v31 }
 0x2a7   :  { %2612 = vmatprep.subr.bf16.mxu1 %v4196_v32 }
 0x2aa   :  { %2613 = vmatpush1.bf16.msra.mxu1 %v4194_v34 }
 0x2ab   :  { %2614 = vmatprep.subr.bf16.mxu1 %v4199_v2 }
 0x2ae   :  { %2615 = vmatpush1.bf16.msra.mxu1 %v4197_v35 }
 0x2af   :  { %2616 = vmatprep.subr.bf16.mxu1 %v4202_v36 }
 0x2b2   :  { %2617 = vmatpush1.bf16.msra.mxu1 %v4200_v38 }
 0x2b3   :  { %2618 = vmatprep.subr.bf16.mxu1 %v4205_v40 }
 0x2b6   :  { %2619 = vmatpush1.bf16.msra.mxu1 %v4203_v41 }
 0x2b7   :  { %2620 = vmatprep.subr.bf16.mxu1 %v4208_v42 }
 0x2ba   :  { %2621 = vmatpush1.bf16.msra.mxu1 %v4206_v43 }
 0x2bb   :  { %2633 = vmatprep.subr.bf16.mxu1 %v4211_v44 }
 0x2bd   :  { %2623 = vmatmul.mubr.bf16.vlgmr.msra.gmra.mrb[4].mxu1 %v4631_v37  ;;  %v4224_v37 = vld [vmem:[#allocation5 + $0x700] ss:$24 sps:$4 sm:$0xff]  }
 0x2be   :  { %2634 = vmatpush1.bf16.msra.mxu1 %v4209_v45  ;;  %2665 = vmatprep.mubr.bf16.mxu1 %v4639_v17  ;;  %v4227_v17 = vld [vmem:[#allocation5 + $0x730] ss:$24 sps:$4 sm:$0xff]  }
 0x2bf   :  { %2635 = vmatprep.subr.bf16.mxu1 %v4214_v46 }
 0x2c2   :  { %2636 = vmatpush1.bf16.msra.mxu1 %v4212_v47 }
 0x2c3   :  { %2637 = vmatprep.subr.bf16.mxu1 %v4217_v48 }
 0x2c6   :  { %2638 = vmatpush1.bf16.msra.mxu1 %v4215_v50  ;;  %v4274_v50 = vld [vmem:[#allocation8 + $0x80] sm:$0xff]  }
 0x2c7   :  { %2639 = vmatprep.subr.bf16.mxu1 %v4220_v51 }
 0x2ca   :  { %2640 = vmatpush1.bf16.msra.mxu1 %v4218_v52  ;;  %v4275_v52 = vld [vmem:[#allocation8 + $0xc8] sm:$0xff]  }
 0x2cb   :  { %2641 = vmatprep.subr.bf16.mxu1 %v4223_v53  ;;  %v4276_v53 = vld [vmem:[#allocation8 + $0x88] sm:$0xff]  }
 0x2ce   :  { %2642 = vmatpush1.bf16.msra.mxu1 %v4221_v54  ;;  %v4277_v54 = vld [vmem:[#allocation8 + $0xd0] sm:$0xff]  }
 0x2cf   :  { %2643 = vmatprep.subr.bf16.mxu1 %v4226_v55  ;;  %v4278_v55 = vld [vmem:[#allocation8 + $0x90] sm:$0xff]  }
 0x2d2   :  { %2644 = vmatpush1.bf16.msra.mxu1 %v4224_v37  ;;  %v4279_v37 = vld [vmem:[#allocation8 + $0xd8] sm:$0xff]  }
 0x2d3   :  { %2645 = vmatprep.subr.bf16.mxu1 %v4229_v56  ;;  %v4280_v56 = vld [vmem:[#allocation8 + $0x98] sm:$0xff]  }
 0x2d6   :  { %2646 = vmatpush1.bf16.msra.mxu1 %v4227_v17  ;;  %v4281_v17 = vld [vmem:[#allocation8 + $0xe0] sm:$0xff]  }
 0x2d7   :  { %2647 = vmatprep.subr.bf16.mxu1 %v4232_v57  ;;  %v4282_v57 = vld [vmem:[#allocation8 + $0xa0] sm:$0xff]  }
 0x2da   :  { %2648 = vmatpush1.bf16.msra.mxu1 %v4230_v58  ;;  %v4283_v58 = vld [vmem:[#allocation8 + $0xe8] sm:$0xff]  }
 0x2db   :  { %2649 = vmatprep.subr.bf16.mxu1 %v4235_v59  ;;  %v4284_v59 = vld [vmem:[#allocation8 + $0xa8] sm:$0xff]  }
 0x2de   :  { %2650 = vmatpush1.bf16.msra.mxu1 %v4233_v60  ;;  %v4285_v60 = vld [vmem:[#allocation8 + $0xf0] sm:$0xff]  }
 0x2df   :  { %2651 = vmatprep.subr.bf16.mxu1 %v4238_v61  ;;  %v4286_v61 = vld [vmem:[#allocation8 + $0xb0] sm:$0xff]  }
 0x2e2   :  { %2652 = vmatpush1.bf16.msra.mxu1 %v4236_v62  ;;  %v4287_v62 = vld [vmem:[#allocation8 + $0xf8] sm:$0xff]  }
 0x2e3   :  { %2653 = vmatprep.subr.bf16.mxu1 %v4241_v1  ;;  %v4288_v1 = vld [vmem:[#allocation8 + $0xb8] sm:$0xff]  }
 0x2e6   :  { %2654 = vmatpush1.bf16.msra.mxu1 %v4239_v3  ;;  %v4289_v3 = vld [vmem:[#allocation8 + $0x140] sm:$0xff]  }
 0x2e7   :  { %2655 = vmatprep.subr.bf16.mxu1 %v4244_v4  ;;  %v4290_v4 = vld [vmem:[#allocation8 + $0x100] sm:$0xff]  }
 0x2ea   :  { %2656 = vmatpush1.bf16.msra.mxu1 %v4242_v5  ;;  %v4291_v5 = vld [vmem:[#allocation8 + $0x148] sm:$0xff]  }
 0x2eb   :  { %2657 = vmatprep.subr.bf16.mxu1 %v4247_v6  ;;  %v4292_v6 = vld [vmem:[#allocation8 + $0x108] sm:$0xff]  }
 0x2ee   :  { %2658 = vmatpush1.bf16.msra.mxu1 %v4245_v63  ;;  %v4293_v63 = vld [vmem:[#allocation8 + $0x150] sm:$0xff]  }
 0x2ef   :  { %2659 = vmatprep.subr.bf16.mxu1 %v4250_v7  ;;  %v4294_v7 = vld [vmem:[#allocation8 + $0x110] sm:$0xff]  }
 0x2f2   :  { %2660 = vmatpush1.bf16.msra.mxu1 %v4248_v8  ;;  %v4295_v8 = vld [vmem:[#allocation8 + $0x158] sm:$0xff]  }
 0x2f3   :  { %2661 = vmatprep.subr.bf16.mxu1 %v4253_v39  ;;  %v4296_v39 = vld [vmem:[#allocation8 + $0x118] sm:$0xff]  }
 0x2f6   :  { %2662 = vmatpush1.bf16.msra.mxu1 %v4251_v9  ;;  %v4297_v9 = vld [vmem:[#allocation8 + $0x160] sm:$0xff]  }
 0x2f7   :  { %2663 = vmatprep.subr.bf16.mxu1 %v4256_v10  ;;  %v4298_v10 = vld [vmem:[#allocation8 + $0x120] sm:$0xff]  }
 0x2fa   :  { %2664 = vmatpush1.bf16.msra.mxu1 %v4254_v11  ;;  %v4299_v11 = vld [vmem:[#allocation8 + $0x168] sm:$0xff]  }
 0x2fd   :  { %2666 = vmatmul.mubr.bf16.vlgmr.msra.gmra.mrb[4].mxu1 %v4637_v15  ;;  %v834_v15 = vrot.slane %v4657_v14, %v833_v19  ;;  %v4303_v19 = vld [vmem:[#allocation8 + $0x178] sm:$0xff]  }
 0x310   :  { %v2409_v49 = vpop.f32.mrb[0].mxu1 }
 0x311   :  { %v3702_v22 = vadd.f32 %v2409_v49, %v822_v20  ;;  %v2538_v23 = vpop.f32.mrb[12].mxu0  ;;  %v2411_v24 = vpop.f32.mrb[1].mxu1 }
 0x312   :  { %v3706_v25 = vadd.f32 %v2538_v23, %v830_v21  ;;  %v3703_v26 = vadd.f32 %v2411_v24, %v826_v0  ;;  %v2540_v27 = vpop.f32.mrb[13].mxu0  ;;  %v2413_v28 = vpop.f32.mrb[2].mxu1 }
 0x313   :  { %4305 = vtanh.f32 %v3702_v22  ;;  %v3707_v29 = vadd.f32 %v2540_v27, %v834_v15  ;;  %v3704_v30 = vadd.f32 %v2413_v28, %v822_v20  ;;  %v2542_v31 = vpop.f32.mrb[14].mxu0  ;;  %v2415_v32 = vpop.f32.mrb[3].mxu1  ;;  %v4304_v20 = vld [vmem:[#allocation8 + $0x138] sm:$0xff]  }
 0x314   :  { %4307 = vtanh.f32 %v3706_v25  ;;  %v3708_v33 = vadd.f32 %v2542_v31, %v830_v21  ;;  %v2544_v34 = vpop.f32.mrb[15].mxu0  ;;  %v3705_v2 = vadd.f32 %v2415_v32, %v826_v0  ;;  %v837_v21 = vsub.s32 4, %v4654_v12 }
 0x315   :  { %4309 = vtanh.f32 %v3703_v26  ;;  %v3709_v35 = vadd.f32 %v2544_v34, %v834_v15  ;;  %v841_v0 = vsub.s32 5, %v4654_v12 }
 0x316   :  { %4311 = vtanh.f32 %v3707_v29  ;;  %v838_v15 = vrot.slane %v4657_v14, %v837_v21 }
 0x317   :  { %4313 = vtanh.f32 %v3704_v30  ;;  %v842_v49 = vrot.slane %v4657_v14, %v841_v0 }
 0x318   :  { %4315 = vtanh.f32 %v3708_v33 }
 0x319   :  { %4317 = vtanh.f32 %v3705_v2 }
 0x31a   :  { %4319 = vtanh.f32 %v3709_v35 }
 0x31d   :  { %v4306_v36 = vpop.eup %4305 }
 0x31e   :  { %v4308_v38 = vpop.eup %4307 }
 0x31f   :  { %v4310_v40 = vpop.eup %4309 }
 0x320   :  { %v4312_v41 = vpop.eup %4311 }
 0x321   :  { %v4314_v42 = vpop.eup %4313 }
 0x322   :  { %v4316_v43 = vpop.eup %4315  ;;  %v2688_v44 = vpack.c.bf16 %v4314_v42, %v4306_v36 }
 0x323   :  { %v4318_v45 = vpop.eup %4317  ;;  %v2690_v46 = vpack.c.bf16 %v4316_v43, %v4308_v38 }
 0x324   :  { %v4320_v47 = vpop.eup %4319  ;;  %v2689_v48 = vpack.c.bf16 %v4318_v45, %v4310_v40 }
 0x325   :  { %v2691_v51 = vpack.c.bf16 %v4320_v47, %v4312_v41  ;;  %v3585_v41 = vld [vmem:[#allocation10] ss:$0 sm:$0xff] }
 0x326   :  { %3117 = vmatprep.mubr.bf16.mxu0 %v2689_v48 }
 0x327   :  { %3118 = vmatmul.mubr.bf16.vlgmr.msra.gmra.mrb[16].mxu0 %v2688_v44 }
 0x328   :  { %3659 = vmatpush3.bf16.msra.mxu0 %v4274_v50  ;;  %3158 = vmatprep.mubr.bf16.mxu0 %v2691_v51 }
 0x329   :  { %3660 = vmatprep.subr.bf16.mxu0 %v4275_v52 }
 0x32c   :  { %3661 = vmatpush3.bf16.msra.mxu0 %v4276_v53 }
 0x32d   :  { %3662 = vmatprep.subr.bf16.mxu0 %v4277_v54 }
 0x330   :  { %3663 = vmatpush3.bf16.msra.mxu0 %v4278_v55 }
 0x331   :  { %3664 = vmatprep.subr.bf16.mxu0 %v4279_v37 }
 0x334   :  { %3665 = vmatpush3.bf16.msra.mxu0 %v4280_v56 }
 0x335   :  { %3666 = vmatprep.subr.bf16.mxu0 %v4281_v17 }
 0x338   :  { %3667 = vmatpush3.bf16.msra.mxu0 %v4282_v57 }
 0x339   :  { %3668 = vmatprep.subr.bf16.mxu0 %v4283_v58 }
 0x33c   :  { %3669 = vmatpush3.bf16.msra.mxu0 %v4284_v59 }
 0x33d   :  { %3670 = vmatprep.subr.bf16.mxu0 %v4285_v60 }
 0x340   :  { %3671 = vmatpush3.bf16.msra.mxu0 %v4286_v61 }
 0x341   :  { %3672 = vmatprep.subr.bf16.mxu0 %v4287_v62 }
 0x344   :  { %3673 = vmatpush3.bf16.msra.mxu0 %v4288_v1 }
 0x345   :  { %3680 = vmatprep.subr.bf16.mxu0 %v4289_v3 }
 0x347   :  { %3159 = vmatmul.mubr.bf16.vlgmr.msra.gmra.mrb[20].mxu0 %v2690_v46 }
 0x348   :  { %3681 = vmatpush3.bf16.msra.mxu0 %v4290_v4 }
 0x349   :  { %3682 = vmatprep.subr.bf16.mxu0 %v4291_v5 }
 0x34c   :  { %3683 = vmatpush3.bf16.msra.mxu0 %v4292_v6 }
 0x34d   :  { %3684 = vmatprep.subr.bf16.mxu0 %v4293_v63 }
 0x350   :  { %3685 = vmatpush3.bf16.msra.mxu0 %v4294_v7 }
 0x351   :  { %3686 = vmatprep.subr.bf16.mxu0 %v4295_v8 }
 0x354   :  { %3687 = vmatpush3.bf16.msra.mxu0 %v4296_v39 }
 0x355   :  { %3688 = vmatprep.subr.bf16.mxu0 %v4297_v9 }
 0x358   :  { %3689 = vmatpush3.bf16.msra.mxu0 %v4298_v10 }
 0x359   :  { %3690 = vmatprep.subr.bf16.mxu0 %v4299_v11 }
 0x35c   :  { %3691 = vmatpush3.bf16.msra.mxu0 %v4300_v13 }
 0x35d   :  { %3692 = vmatprep.subr.bf16.mxu0 %v4301_v16 }
 0x360   :  { %3693 = vmatpush3.bf16.msra.mxu0 %v4302_v18 }
 0x361   :  { %3694 = vmatprep.subr.bf16.mxu0 %v4303_v19 }
 0x364   :  { %3695 = vmatpush3.bf16.msra.mxu0 %v4304_v20 }
 0x3d0   :  { %v2667_v22 = vpop.f32.mrb[4].mxu1 }
 0x3d1   :  { %v3710_v23 = vadd.f32 %v2667_v22, %v838_v15  ;;  %v2669_v24 = vpop.f32.mrb[5].mxu1 }
 0x3d2   :  { %v3711_v25 = vadd.f32 %v2669_v24, %v842_v49  ;;  %v2671_v26 = vpop.f32.mrb[6].mxu1 }
 0x3d3   :  { %4321 = vtanh.f32 %v3710_v23  ;;  %v3712_v27 = vadd.f32 %v2671_v26, %v838_v15  ;;  %v2673_v28 = vpop.f32.mrb[7].mxu1 }
 0x3d4   :  { %4323 = vtanh.f32 %v3711_v25  ;;  %v3713_v29 = vadd.f32 %v2673_v28, %v842_v49 }
 0x3d5   :  { %4325 = vtanh.f32 %v3712_v27 }
 0x3d6   :  { %4327 = vtanh.f32 %v3713_v29 }
 0x3dd   :  { %v4322_v30 = vpop.eup %4321 }
 0x3de   :  { %v4324_v31 = vpop.eup %4323 }
 0x3df   :  { %v4326_v32 = vpop.eup %4325 }
 0x3e0   :  { %v4328_v12 = vpop.eup %4327  ;;  %v2692_v33 = vpack.c.bf16 %v4326_v32, %v4322_v30 }
 0x3e1   :  { %v2693_v34 = vpack.c.bf16 %v4328_v12, %v4324_v31 }
 0x3e3   :  { %3199 = vmatprep.mubr.bf16.mxu0 %v2693_v34 }
 0x3e4   :  { %3200 = vmatmul.mubr.bf16.vlgmr.msra.gmra.mrb[24].mxu0 %v2692_v33 }
 0x3fa   :  { %v3652_v14 = vpop.f32.mrb[16].mxu0 }
 0x3fb   :  { %v3653_v2 = vpop.f32.mrb[17].mxu0 }
 0x3fc   :  { %v3654_v35 = vadd.f32 %v3653_v2, %v3652_v14  ;;  %v3655_v36 = vpop.f32.mrb[18].mxu0 }
 0x3fd   :  { %v3656_v38 = vpop.f32.mrb[19].mxu0 }
 0x3fe   :  { %v3657_v40 = vadd.f32 %v3656_v38, %v3655_v36  ;;  %v3120_v44 = vadd.f32 %v3654_v35, %v3585_v41 }
 0x400   :  { %v3123_v48 = vadd.f32 %v3657_v40, %v3585_v41 }
 0x41a   :  { %v3674_v42 = vpop.f32.mrb[20].mxu0 }
 0x41b   :  { %v3675_v43 = vpop.f32.mrb[21].mxu0 }
 0x41c   :  { %v3676_v45 = vadd.f32 %v3675_v43, %v3674_v42  ;;  %v3677_v46 = vpop.f32.mrb[22].mxu0 }
 0x41d   :  { %v3678_v47 = vpop.f32.mrb[23].mxu0 }
 0x41e   :  { %v3161_v50 = vadd.f32 %v3676_v45, %v3120_v44  ;;  %v3679_v51 = vadd.f32 %v3678_v47, %v3677_v46 }
 0x420   :  { %v3164_v52 = vadd.f32 %v3679_v51, %v3123_v48 }
 0x4b7   :  { %v3696_v53 = vpop.f32.mrb[24].mxu0 }
 0x4b8   :  { %v3697_v54 = vpop.f32.mrb[25].mxu0 }
 0x4b9   :  { %v3698_v55 = vadd.f32 %v3697_v54, %v3696_v53  ;;  %v3699_v37 = vpop.f32.mrb[26].mxu0 }
 0x4ba   :  { %v3700_v56 = vpop.f32.mrb[27].mxu0 }
 0x4bb   :  { %v3202_v17 = vadd.f32 %v3698_v55, %v3161_v50  ;;  %v3701_v57 = vadd.f32 %v3700_v56, %v3699_v37 }
 0x4bd   :  { %v3634_v58 = vmul.f32 -1.442695, %v3202_v17  ;;  %v3205_v59 = vadd.f32 %v3701_v57, %v3164_v52 }
 0x4bf   :  { %4329 = vpow2.f32 %v3634_v58  ;;  %v3635_v60 = vmul.f32 -1.442695, %v3205_v59 }
 0x4c1   :  { %4331 = vpow2.f32 %v3635_v60 }
 0x4c9   :  { %v4330_v61 = vpop.eup %4329 }
 0x4ca   :  { %v3214_v62 = vadd.f32 1.0, %v4330_v61 }
 0x4cb   :  { %v4332_v1 = vpop.eup %4331 }
 0x4cc   :  { %4333 = vrcp.f32 %v3214_v62  ;;  %v3215_v3 = vadd.f32 1.0, %v4332_v1 }
 0x4ce   :  { %4335 = vrcp.f32 %v3215_v3 }
 0x4d6   :  { %v4334_v4 = vpop.eup %4333 }
 0x4d7   :  { %3220 = vst [vmem:[#allocation11] sm:$0xff] %v4334_v4 }
 0x4d8   :  { %v4336_v5 = vpop.eup %4335 }
 0x4d9   :  { %3221 = vst [vmem:[#allocation11 + $0x8] sm:$0xff] %v4336_v5 }
 0x4da   :  { %4458 = shalt.err (!%p4455_p2)
}
 0x4db   :  { %s4459_s17 = scalar_lea.hbm %s4688_s6, 256 }
 0x4dc   :  { %p4460_p3 = scmp.ne.s32.totalorder %s4688_s6, %s4459_s17  ;;  %p4463_p4 = scmp.lt.u32.totalorder %s4459_s17, %s4688_s6 }
 0x4de   :  { %p4465_p5 = pnand %p4463_p4, %p4460_p3 }
 0x4e0   :  { %4468 = shalt.err (!%p4465_p5)
}
 0x4e1   :  { %s4489_s21 = smov 128   ;;  %s4490_s1 = smov 8  }
 0x4e2   :  { %3233 = dma.vmem_to_hbm [thread:$0]  %s3228_s5, 256, %s4688_s6, [#allocation4], %s4489_s21, %s4489_s21, %s4490_s1  }
 0x4e3   :  { %4475 = dma.done.wait [#allocation4], 256  }
 0x4e4   :  { %4476 = vsyncadd [#allocation4], 4294967040 }
 0x4e5   :  { %3237 = vsyncpa [#allocation3], 1 }
 0x4e6   :  { %3238 = vsyncpa [#allocation6], 1 }
 0x4e7   :  { %3239 = vsyncpa [#allocation9], 1 }
 0x4e8   :  { %3240 = vsyncpa [#allocation4], 1 }

</bundles_post_ra>
